<compile_context>
chip_gen: v6e
topology: v6e:2x2x1
jax: 0.10.0
libtpu: 0.0.40
codegen_flags: <defaults>
</compile_context>

<pallas_src>
import jax
import jax.numpy as jnp
from jax.experimental import pallas as pl
from jax.experimental.pallas import tpu as pltpu

EMBEDDIM = 768
FCHIDDEN = 256
NUMLAYERS = 12
NUMCLASSES = 4

_LANE = 128  # lane-dense output slab width


def _round_up(x, m):
    return (x + m - 1) // m * m


def _choose_batch_tile(B, block_b):
    """Sublane-dense batch tile (multiple of 16); prefer one that divides B."""
    if B >= 32:
        # Aim for >= 2 grid steps so a 2-TensorCore part can split the batch axis.
        cap = min(block_b, _round_up(-(-B // 2), 16))
    else:
        cap = min(block_b, _round_up(B, 16))
    cap = max(16, cap - cap % 16)
    t = cap
    while t >= max(16, cap - 64):
        if B % t == 0:
            return t          # divides B exactly: no tail padding at all
        t -= 16
    return cap                # irregular batch: tail block gets zero-padded


def bert_attention_kernel(h_ref, q_ref, w_ref, b_ref, out_ref):
    # h_ref : (TB, L*E)  producer dtype (bf16 fast path)
    # q_ref : (1, E)     same dtype as h
    # w_ref : (E, 128)   bf16 fused projection (w_h @ fc_w, zero-padded lanes)
    # b_ref : (1, 128)   f32 bias (zero-padded lanes)
    # out   : (TB, 128)  f32
    E = q_ref.shape[1]
    L = h_ref.shape[1] // E
    TB = h_ref.shape[0]
    cdt = h_ref.dtype

    q = q_ref[...]                                          # (1, E)

    # --- scores: s_l[b] = <h[b, l, :], q>; products in h dtype, f32 accumulate.
    s = []
    for l in range(L):
        hl = h_ref[:, l * E:(l + 1) * E]                    # (TB, E) static slice
        s.append(jnp.sum(hl * q, axis=-1, keepdims=True, dtype=jnp.float32))

    # --- softmax over the L per-row scalars (no padded (TB, L, 1) intermediates).
    m = s[0]
    for l in range(1, L):
        m = jnp.maximum(m, s[l])
    e = [jnp.exp(s[l] - m) for l in range(L)]
    denom = e[0]
    for l in range(1, L):
        denom = denom + e[l]
    inv = pl.reciprocal(denom, approx=True)                 # (TB, 1), EUP slot
    w_l = [(e[l] * inv).astype(cdt) for l in range(L)]      # (TB, 1) weights

    # --- context: ctx[b, :] = sum_l w_l[b] * h[b, l, :]
    # Products in the h dtype; layers paired so two narrow products share one
    # f32 up-convert + accumulate.
    ctx = jnp.zeros((TB, E), jnp.float32)
    for l in range(0, L - 1, 2):
        h0 = h_ref[:, l * E:(l + 1) * E]
        h1 = h_ref[:, (l + 1) * E:(l + 2) * E]
        ctx = ctx + (w_l[l] * h0 + w_l[l + 1] * h1).astype(jnp.float32)
    if L % 2:
        hl = h_ref[:, (L - 1) * E:L * E]
        ctx = ctx + (w_l[L - 1] * hl).astype(jnp.float32)

    # --- fused projection on the MXU: (TB, E) @ (E, 128), lane-dense store.
    out = jnp.dot(ctx.astype(jnp.bfloat16), w_ref[...],
                  preferred_element_type=jnp.float32)
    out_ref[...] = out + b_ref[...]


def bert_attention_head(h, q, w_h, fc_w, fc_b, *, block_b=256):
    """Attention-pooling head.

    h    : (B, L*E) or (B, L, E) stacked per-layer CLS states, in the producer's
           dtype (bf16 preferred). The wrapper never copies or casts h except
           for a rare tail pad when B is not a multiple of the chosen tile.
    q    : (1, E); w_h: (E, F); fc_w: (F, C); fc_b: (C,) or (1, C).
    """
    if h.ndim == 3:
        Bh, Lh, Eh = h.shape
        h = h.reshape(Bh, Lh * Eh)        # row-major collapse: free, no relayout
    B, LE = h.shape
    E = q.shape[-1]
    L = LE // E
    C = fc_w.shape[-1]
    assert L * E == LE and C <= _LANE

    # Offline parameter fold (exact: dropout is identity at inference):
    #   out = ((ctx @ w_h) @ fc_w) + b == ctx @ (w_h @ fc_w) + b
    w_fused = w_h.astype(jnp.float32) @ fc_w.astype(jnp.float32)        # (E, C)
    w_pad = jnp.zeros((E, _LANE), jnp.float32).at[:, :C].set(w_fused)
    b_pad = jnp.zeros((1, _LANE), jnp.float32).at[:, :C].set(
        fc_b.reshape(1, C).astype(jnp.float32))
    w_bf = w_pad.astype(jnp.bfloat16)
    q_c = q.reshape(1, E).astype(h.dtype)          # tiny; match h's dtype

    TB = _choose_batch_tile(B, block_b)
    Bp = _round_up(B, TB)
    if Bp != B:
        # Rare path (irregular batch size): zero-pad the tail rows; padded rows
        # produce finite garbage that is sliced off below.
        h = jnp.pad(h, ((0, Bp - B), (0, 0)))

    # VMEM budget: double-buffered h block + working set, with headroom.
    h_block_bytes = 2 * TB * LE * h.dtype.itemsize
    vmem_limit = int(min(100 * 2**20, max(16 * 2**20, 2 * h_block_bytes + 8 * 2**20)))

    out = pl.pallas_call(
        bert_attention_kernel,
        out_shape=jax.ShapeDtypeStruct((Bp, _LANE), jnp.float32),
        grid_spec=pltpu.PrefetchScalarGridSpec(
            num_scalar_prefetch=0,
            grid=(Bp // TB,),
            in_specs=[
                pl.BlockSpec((TB, LE), lambda b: (b, 0)),
                pl.BlockSpec((1, E), lambda b: (0, 0)),
                pl.BlockSpec((E, _LANE), lambda b: (0, 0)),
                pl.BlockSpec((1, _LANE), lambda b: (0, 0)),
            ],
            out_specs=pl.BlockSpec((TB, _LANE), lambda b: (b, 0)),
        ),
        compiler_params=pltpu.CompilerParams(
            dimension_semantics=("parallel",),      # batch rows are independent
            vmem_limit_bytes=vmem_limit,
        ),
    )(h, q_c, w_bf, b_pad)

    return out[:B, :C]


def reference(h, q, w_h, fc_w, fc_b):
    s = jnp.einsum("oe,ble->bl", q, h)                 # (B, L)
    w = jax.nn.softmax(s, axis=-1)                     # (B, L)
    ctx = jnp.einsum("bl,ble->be", w, h)               # (B, E)
    v = ctx @ w_h                                      # (B, F)
    return v @ fc_w + fc_b.reshape(1, -1)              # (B, C)


if __name__ == "__main__":
    key = jax.random.PRNGKey(0)
    k_h, k_q, k_wh, k_fcw, k_fcb = jax.random.split(key, 5)

    # Parameters matching the module's shapes/init.
    q = 0.1 * jax.random.normal(k_q, (1, EMBEDDIM), dtype=jnp.float32)
    w_h = 0.1 * jax.random.normal(k_wh, (EMBEDDIM, FCHIDDEN), dtype=jnp.float32)
    bound = 1.0 / (FCHIDDEN ** 0.5)
    fc_w = jax.random.uniform(k_fcw, (FCHIDDEN, NUMCLASSES), jnp.float32,
                              minval=-bound, maxval=bound)
    fc_b = jax.random.uniform(k_fcb, (1, NUMCLASSES), jnp.float32,
                              minval=-bound, maxval=bound)

    # Test 1: small batch (pad-to-tile path, single grid step).
    B = 2
    h = jax.random.normal(k_h, (B, NUMLAYERS, EMBEDDIM), dtype=jnp.float32)
    # "Producer" hands over the stacked CLS states already flattened + in bf16
    # (a row-major reshape + the backbone emitting bf16; no extra HBM pass here).
    h2d = h.reshape(B, NUMLAYERS * EMBEDDIM).astype(jnp.bfloat16)
    out = jax.block_until_ready(bert_attention_head(h2d, q, w_h, fc_w, fc_b))
    ref = reference(h, q, w_h, fc_w, fc_b)
    assert out.shape == (B, NUMCLASSES)
    # Loose tolerance: bf16 h / bf16 products / bf16 fused weight, f32 accumulation.
    assert jnp.allclose(out, ref, atol=5e-2, rtol=5e-2), "mismatch vs reference"

    # Test 2: batch that divides the tile exactly (copy-free path, 2 grid steps).
    B2 = 64
    h2 = jax.random.normal(jax.random.PRNGKey(1), (B2, NUMLAYERS, EMBEDDIM),
                           dtype=jnp.float32)
    h2_2d = h2.reshape(B2, NUMLAYERS * EMBEDDIM).astype(jnp.bfloat16)
    out2 = jax.block_until_ready(bert_attention_head(h2_2d, q, w_h, fc_w, fc_b))
    ref2 = reference(h2, q, w_h, fc_w, fc_b)
    assert out2.shape == (B2, NUMCLASSES)
    assert jnp.allclose(out2, ref2, atol=5e-2, rtol=5e-2), "mismatch vs reference (tiled)"

    print("KERNEL_OK")
</pallas_src>

<mosaic_0001>
module attributes {stable_mosaic.version = 11 : i64} {
  func.func @bert_attention_kernel(%arg0: i32, %arg1: memref<16x9216xbf16, #tpu.memory_space<vmem>>, %arg2: memref<1x768xbf16, #tpu.memory_space<vmem>>, %arg3: memref<768x128xbf16, #tpu.memory_space<vmem>>, %arg4: memref<1x128xf32, #tpu.memory_space<vmem>>, %arg5: memref<16x128xf32, #tpu.memory_space<vmem>>) attributes {dimension_semantics = [#tpu.dimension_semantics<parallel>], iteration_bounds = array<i64: 1>, scalar_prefetch = 0 : i64, scratch_operands = 0 : i64, tpu.core_type = #tpu.core_type<tc>, window_params = [{transform_indices = @transform_0, window_bounds = array<i64: 16, 9216>}, {pipeline_mode = #tpu.pipeline_mode<synchronous>, transform_indices = @transform_1, window_bounds = array<i64: 1, 768>}, {pipeline_mode = #tpu.pipeline_mode<synchronous>, transform_indices = @transform_2, window_bounds = array<i64: 768, 128>}, {pipeline_mode = #tpu.pipeline_mode<synchronous>, transform_indices = @transform_3, window_bounds = array<i64: 1, 128>}, {transform_indices = @transform_4, window_bounds = array<i64: 16, 128>}]} {
    %c0 = arith.constant 0 : index
    %c0_0 = arith.constant 0 : index
    %0 = vector.load %arg2[%c0, %c0_0] : memref<1x768xbf16, #tpu.memory_space<vmem>>, vector<1x768xbf16>
    %c0_1 = arith.constant 0 : index
    %c0_2 = arith.constant 0 : index
    %1 = vector.load %arg1[%c0_1, %c0_2] : memref<16x9216xbf16, #tpu.memory_space<vmem>>, vector<16x768xbf16>
    %2 = vector.broadcast %0 : vector<1x768xbf16> to vector<16x768xbf16>
    %3 = arith.mulf %1, %2 : vector<16x768xbf16>
    %4 = arith.extf %3 : vector<16x768xbf16> to vector<16x768xf32>
    %cst = arith.constant dense<0.000000e+00> : vector<16xf32>
    %5 = vector.multi_reduction <add>, %4, %cst [1] : vector<16x768xf32> to vector<16xf32>
    %6 = vector.shape_cast %5 : vector<16xf32> to vector<16x1xf32>
    %c0_3 = arith.constant 0 : index
    %c768 = arith.constant 768 : index
    %7 = vector.load %arg1[%c0_3, %c768] : memref<16x9216xbf16, #tpu.memory_space<vmem>>, vector<16x768xbf16>
    %8 = vector.broadcast %0 : vector<1x768xbf16> to vector<16x768xbf16>
    %9 = arith.mulf %7, %8 : vector<16x768xbf16>
    %10 = arith.extf %9 : vector<16x768xbf16> to vector<16x768xf32>
    %cst_4 = arith.constant dense<0.000000e+00> : vector<16xf32>
    %11 = vector.multi_reduction <add>, %10, %cst_4 [1] : vector<16x768xf32> to vector<16xf32>
    %12 = vector.shape_cast %11 : vector<16xf32> to vector<16x1xf32>
    %c0_5 = arith.constant 0 : index
    %c1536 = arith.constant 1536 : index
    %13 = vector.load %arg1[%c0_5, %c1536] : memref<16x9216xbf16, #tpu.memory_space<vmem>>, vector<16x768xbf16>
    %14 = vector.broadcast %0 : vector<1x768xbf16> to vector<16x768xbf16>
    %15 = arith.mulf %13, %14 : vector<16x768xbf16>
    %16 = arith.extf %15 : vector<16x768xbf16> to vector<16x768xf32>
    %cst_6 = arith.constant dense<0.000000e+00> : vector<16xf32>
    %17 = vector.multi_reduction <add>, %16, %cst_6 [1] : vector<16x768xf32> to vector<16xf32>
    %18 = vector.shape_cast %17 : vector<16xf32> to vector<16x1xf32>
    %c0_7 = arith.constant 0 : index
    %c2304 = arith.constant 2304 : index
    %19 = vector.load %arg1[%c0_7, %c2304] : memref<16x9216xbf16, #tpu.memory_space<vmem>>, vector<16x768xbf16>
    %20 = vector.broadcast %0 : vector<1x768xbf16> to vector<16x768xbf16>
    %21 = arith.mulf %19, %20 : vector<16x768xbf16>
    %22 = arith.extf %21 : vector<16x768xbf16> to vector<16x768xf32>
    %cst_8 = arith.constant dense<0.000000e+00> : vector<16xf32>
    %23 = vector.multi_reduction <add>, %22, %cst_8 [1] : vector<16x768xf32> to vector<16xf32>
    %24 = vector.shape_cast %23 : vector<16xf32> to vector<16x1xf32>
    %c0_9 = arith.constant 0 : index
    %c3072 = arith.constant 3072 : index
    %25 = vector.load %arg1[%c0_9, %c3072] : memref<16x9216xbf16, #tpu.memory_space<vmem>>, vector<16x768xbf16>
    %26 = vector.broadcast %0 : vector<1x768xbf16> to vector<16x768xbf16>
    %27 = arith.mulf %25, %26 : vector<16x768xbf16>
    %28 = arith.extf %27 : vector<16x768xbf16> to vector<16x768xf32>
    %cst_10 = arith.constant dense<0.000000e+00> : vector<16xf32>
    %29 = vector.multi_reduction <add>, %28, %cst_10 [1] : vector<16x768xf32> to vector<16xf32>
    %30 = vector.shape_cast %29 : vector<16xf32> to vector<16x1xf32>
    %c0_11 = arith.constant 0 : index
    %c3840 = arith.constant 3840 : index
    %31 = vector.load %arg1[%c0_11, %c3840] : memref<16x9216xbf16, #tpu.memory_space<vmem>>, vector<16x768xbf16>
    %32 = vector.broadcast %0 : vector<1x768xbf16> to vector<16x768xbf16>
    %33 = arith.mulf %31, %32 : vector<16x768xbf16>
    %34 = arith.extf %33 : vector<16x768xbf16> to vector<16x768xf32>
    %cst_12 = arith.constant dense<0.000000e+00> : vector<16xf32>
    %35 = vector.multi_reduction <add>, %34, %cst_12 [1] : vector<16x768xf32> to vector<16xf32>
    %36 = vector.shape_cast %35 : vector<16xf32> to vector<16x1xf32>
    %c0_13 = arith.constant 0 : index
    %c4608 = arith.constant 4608 : index
    %37 = vector.load %arg1[%c0_13, %c4608] : memref<16x9216xbf16, #tpu.memory_space<vmem>>, vector<16x768xbf16>
    %38 = vector.broadcast %0 : vector<1x768xbf16> to vector<16x768xbf16>
    %39 = arith.mulf %37, %38 : vector<16x768xbf16>
    %40 = arith.extf %39 : vector<16x768xbf16> to vector<16x768xf32>
    %cst_14 = arith.constant dense<0.000000e+00> : vector<16xf32>
    %41 = vector.multi_reduction <add>, %40, %cst_14 [1] : vector<16x768xf32> to vector<16xf32>
    %42 = vector.shape_cast %41 : vector<16xf32> to vector<16x1xf32>
    %c0_15 = arith.constant 0 : index
    %c5376 = arith.constant 5376 : index
    %43 = vector.load %arg1[%c0_15, %c5376] : memref<16x9216xbf16, #tpu.memory_space<vmem>>, vector<16x768xbf16>
    %44 = vector.broadcast %0 : vector<1x768xbf16> to vector<16x768xbf16>
    %45 = arith.mulf %43, %44 : vector<16x768xbf16>
    %46 = arith.extf %45 : vector<16x768xbf16> to vector<16x768xf32>
    %cst_16 = arith.constant dense<0.000000e+00> : vector<16xf32>
    %47 = vector.multi_reduction <add>, %46, %cst_16 [1] : vector<16x768xf32> to vector<16xf32>
    %48 = vector.shape_cast %47 : vector<16xf32> to vector<16x1xf32>
    %c0_17 = arith.constant 0 : index
    %c6144 = arith.constant 6144 : index
    %49 = vector.load %arg1[%c0_17, %c6144] : memref<16x9216xbf16, #tpu.memory_space<vmem>>, vector<16x768xbf16>
    %50 = vector.broadcast %0 : vector<1x768xbf16> to vector<16x768xbf16>
    %51 = arith.mulf %49, %50 : vector<16x768xbf16>
    %52 = arith.extf %51 : vector<16x768xbf16> to vector<16x768xf32>
    %cst_18 = arith.constant dense<0.000000e+00> : vector<16xf32>
    %53 = vector.multi_reduction <add>, %52, %cst_18 [1] : vector<16x768xf32> to vector<16xf32>
    %54 = vector.shape_cast %53 : vector<16xf32> to vector<16x1xf32>
    %c0_19 = arith.constant 0 : index
    %c6912 = arith.constant 6912 : index
    %55 = vector.load %arg1[%c0_19, %c6912] : memref<16x9216xbf16, #tpu.memory_space<vmem>>, vector<16x768xbf16>
    %56 = vector.broadcast %0 : vector<1x768xbf16> to vector<16x768xbf16>
    %57 = arith.mulf %55, %56 : vector<16x768xbf16>
    %58 = arith.extf %57 : vector<16x768xbf16> to vector<16x768xf32>
    %cst_20 = arith.constant dense<0.000000e+00> : vector<16xf32>
    %59 = vector.multi_reduction <add>, %58, %cst_20 [1] : vector<16x768xf32> to vector<16xf32>
    %60 = vector.shape_cast %59 : vector<16xf32> to vector<16x1xf32>
    %c0_21 = arith.constant 0 : index
    %c7680 = arith.constant 7680 : index
    %61 = vector.load %arg1[%c0_21, %c7680] : memref<16x9216xbf16, #tpu.memory_space<vmem>>, vector<16x768xbf16>
    %62 = vector.broadcast %0 : vector<1x768xbf16> to vector<16x768xbf16>
    %63 = arith.mulf %61, %62 : vector<16x768xbf16>
    %64 = arith.extf %63 : vector<16x768xbf16> to vector<16x768xf32>
    %cst_22 = arith.constant dense<0.000000e+00> : vector<16xf32>
    %65 = vector.multi_reduction <add>, %64, %cst_22 [1] : vector<16x768xf32> to vector<16xf32>
    %66 = vector.shape_cast %65 : vector<16xf32> to vector<16x1xf32>
    %c0_23 = arith.constant 0 : index
    %c8448 = arith.constant 8448 : index
    %67 = vector.load %arg1[%c0_23, %c8448] : memref<16x9216xbf16, #tpu.memory_space<vmem>>, vector<16x768xbf16>
    %68 = vector.broadcast %0 : vector<1x768xbf16> to vector<16x768xbf16>
    %69 = arith.mulf %67, %68 : vector<16x768xbf16>
    %70 = arith.extf %69 : vector<16x768xbf16> to vector<16x768xf32>
    %cst_24 = arith.constant dense<0.000000e+00> : vector<16xf32>
    %71 = vector.multi_reduction <add>, %70, %cst_24 [1] : vector<16x768xf32> to vector<16xf32>
    %72 = vector.shape_cast %71 : vector<16xf32> to vector<16x1xf32>
    %73 = arith.maximumf %6, %12 : vector<16x1xf32>
    %74 = arith.maximumf %73, %18 : vector<16x1xf32>
    %75 = arith.maximumf %74, %24 : vector<16x1xf32>
    %76 = arith.maximumf %75, %30 : vector<16x1xf32>
    %77 = arith.maximumf %76, %36 : vector<16x1xf32>
    %78 = arith.maximumf %77, %42 : vector<16x1xf32>
    %79 = arith.maximumf %78, %48 : vector<16x1xf32>
    %80 = arith.maximumf %79, %54 : vector<16x1xf32>
    %81 = arith.maximumf %80, %60 : vector<16x1xf32>
    %82 = arith.maximumf %81, %66 : vector<16x1xf32>
    %83 = arith.maximumf %82, %72 : vector<16x1xf32>
    %84 = arith.subf %6, %83 : vector<16x1xf32>
    %85 = math.exp %84 : vector<16x1xf32>
    %86 = arith.subf %12, %83 : vector<16x1xf32>
    %87 = math.exp %86 : vector<16x1xf32>
    %88 = arith.subf %18, %83 : vector<16x1xf32>
    %89 = math.exp %88 : vector<16x1xf32>
    %90 = arith.subf %24, %83 : vector<16x1xf32>
    %91 = math.exp %90 : vector<16x1xf32>
    %92 = arith.subf %30, %83 : vector<16x1xf32>
    %93 = math.exp %92 : vector<16x1xf32>
    %94 = arith.subf %36, %83 : vector<16x1xf32>
    %95 = math.exp %94 : vector<16x1xf32>
    %96 = arith.subf %42, %83 : vector<16x1xf32>
    %97 = math.exp %96 : vector<16x1xf32>
    %98 = arith.subf %48, %83 : vector<16x1xf32>
    %99 = math.exp %98 : vector<16x1xf32>
    %100 = arith.subf %54, %83 : vector<16x1xf32>
    %101 = math.exp %100 : vector<16x1xf32>
    %102 = arith.subf %60, %83 : vector<16x1xf32>
    %103 = math.exp %102 : vector<16x1xf32>
    %104 = arith.subf %66, %83 : vector<16x1xf32>
    %105 = math.exp %104 : vector<16x1xf32>
    %106 = arith.subf %72, %83 : vector<16x1xf32>
    %107 = math.exp %106 : vector<16x1xf32>
    %108 = arith.addf %85, %87 : vector<16x1xf32>
    %109 = arith.addf %108, %89 : vector<16x1xf32>
    %110 = arith.addf %109, %91 : vector<16x1xf32>
    %111 = arith.addf %110, %93 : vector<16x1xf32>
    %112 = arith.addf %111, %95 : vector<16x1xf32>
    %113 = arith.addf %112, %97 : vector<16x1xf32>
    %114 = arith.addf %113, %99 : vector<16x1xf32>
    %115 = arith.addf %114, %101 : vector<16x1xf32>
    %116 = arith.addf %115, %103 : vector<16x1xf32>
    %117 = arith.addf %116, %105 : vector<16x1xf32>
    %118 = arith.addf %117, %107 : vector<16x1xf32>
    %119 = tpu.reciprocal %118 {approx = true} : vector<16x1xf32> -> vector<16x1xf32>
    %120 = arith.mulf %85, %119 : vector<16x1xf32>
    %121 = arith.truncf %120 : vector<16x1xf32> to vector<16x1xbf16>
    %122 = arith.mulf %87, %119 : vector<16x1xf32>
    %123 = arith.truncf %122 : vector<16x1xf32> to vector<16x1xbf16>
    %124 = arith.mulf %89, %119 : vector<16x1xf32>
    %125 = arith.truncf %124 : vector<16x1xf32> to vector<16x1xbf16>
    %126 = arith.mulf %91, %119 : vector<16x1xf32>
    %127 = arith.truncf %126 : vector<16x1xf32> to vector<16x1xbf16>
    %128 = arith.mulf %93, %119 : vector<16x1xf32>
    %129 = arith.truncf %128 : vector<16x1xf32> to vector<16x1xbf16>
    %130 = arith.mulf %95, %119 : vector<16x1xf32>
    %131 = arith.truncf %130 : vector<16x1xf32> to vector<16x1xbf16>
    %132 = arith.mulf %97, %119 : vector<16x1xf32>
    %133 = arith.truncf %132 : vector<16x1xf32> to vector<16x1xbf16>
    %134 = arith.mulf %99, %119 : vector<16x1xf32>
    %135 = arith.truncf %134 : vector<16x1xf32> to vector<16x1xbf16>
    %136 = arith.mulf %101, %119 : vector<16x1xf32>
    %137 = arith.truncf %136 : vector<16x1xf32> to vector<16x1xbf16>
    %138 = arith.mulf %103, %119 : vector<16x1xf32>
    %139 = arith.truncf %138 : vector<16x1xf32> to vector<16x1xbf16>
    %140 = arith.mulf %105, %119 : vector<16x1xf32>
    %141 = arith.truncf %140 : vector<16x1xf32> to vector<16x1xbf16>
    %142 = arith.mulf %107, %119 : vector<16x1xf32>
    %143 = arith.truncf %142 : vector<16x1xf32> to vector<16x1xbf16>
    %cst_25 = arith.constant 0.000000e+00 : f32
    %144 = vector.broadcast %cst_25 : f32 to vector<16x768xf32>
    %c0_26 = arith.constant 0 : index
    %c0_27 = arith.constant 0 : index
    %145 = vector.load %arg1[%c0_26, %c0_27] : memref<16x9216xbf16, #tpu.memory_space<vmem>>, vector<16x768xbf16>
    %c0_28 = arith.constant 0 : index
    %c768_29 = arith.constant 768 : index
    %146 = vector.load %arg1[%c0_28, %c768_29] : memref<16x9216xbf16, #tpu.memory_space<vmem>>, vector<16x768xbf16>
    %147 = vector.broadcast %121 : vector<16x1xbf16> to vector<16x768xbf16>
    %148 = arith.mulf %147, %145 : vector<16x768xbf16>
    %149 = vector.broadcast %123 : vector<16x1xbf16> to vector<16x768xbf16>
    %150 = arith.mulf %149, %146 : vector<16x768xbf16>
    %151 = arith.addf %148, %150 : vector<16x768xbf16>
    %152 = arith.extf %151 : vector<16x768xbf16> to vector<16x768xf32>
    %153 = arith.addf %144, %152 : vector<16x768xf32>
    %c0_30 = arith.constant 0 : index
    %c1536_31 = arith.constant 1536 : index
    %154 = vector.load %arg1[%c0_30, %c1536_31] : memref<16x9216xbf16, #tpu.memory_space<vmem>>, vector<16x768xbf16>
    %c0_32 = arith.constant 0 : index
    %c2304_33 = arith.constant 2304 : index
    %155 = vector.load %arg1[%c0_32, %c2304_33] : memref<16x9216xbf16, #tpu.memory_space<vmem>>, vector<16x768xbf16>
    %156 = vector.broadcast %125 : vector<16x1xbf16> to vector<16x768xbf16>
    %157 = arith.mulf %156, %154 : vector<16x768xbf16>
    %158 = vector.broadcast %127 : vector<16x1xbf16> to vector<16x768xbf16>
    %159 = arith.mulf %158, %155 : vector<16x768xbf16>
    %160 = arith.addf %157, %159 : vector<16x768xbf16>
    %161 = arith.extf %160 : vector<16x768xbf16> to vector<16x768xf32>
    %162 = arith.addf %153, %161 : vector<16x768xf32>
    %c0_34 = arith.constant 0 : index
    %c3072_35 = arith.constant 3072 : index
    %163 = vector.load %arg1[%c0_34, %c3072_35] : memref<16x9216xbf16, #tpu.memory_space<vmem>>, vector<16x768xbf16>
    %c0_36 = arith.constant 0 : index
    %c3840_37 = arith.constant 3840 : index
    %164 = vector.load %arg1[%c0_36, %c3840_37] : memref<16x9216xbf16, #tpu.memory_space<vmem>>, vector<16x768xbf16>
    %165 = vector.broadcast %129 : vector<16x1xbf16> to vector<16x768xbf16>
    %166 = arith.mulf %165, %163 : vector<16x768xbf16>
    %167 = vector.broadcast %131 : vector<16x1xbf16> to vector<16x768xbf16>
    %168 = arith.mulf %167, %164 : vector<16x768xbf16>
    %169 = arith.addf %166, %168 : vector<16x768xbf16>
    %170 = arith.extf %169 : vector<16x768xbf16> to vector<16x768xf32>
    %171 = arith.addf %162, %170 : vector<16x768xf32>
    %c0_38 = arith.constant 0 : index
    %c4608_39 = arith.constant 4608 : index
    %172 = vector.load %arg1[%c0_38, %c4608_39] : memref<16x9216xbf16, #tpu.memory_space<vmem>>, vector<16x768xbf16>
    %c0_40 = arith.constant 0 : index
    %c5376_41 = arith.constant 5376 : index
    %173 = vector.load %arg1[%c0_40, %c5376_41] : memref<16x9216xbf16, #tpu.memory_space<vmem>>, vector<16x768xbf16>
    %174 = vector.broadcast %133 : vector<16x1xbf16> to vector<16x768xbf16>
    %175 = arith.mulf %174, %172 : vector<16x768xbf16>
    %176 = vector.broadcast %135 : vector<16x1xbf16> to vector<16x768xbf16>
    %177 = arith.mulf %176, %173 : vector<16x768xbf16>
    %178 = arith.addf %175, %177 : vector<16x768xbf16>
    %179 = arith.extf %178 : vector<16x768xbf16> to vector<16x768xf32>
    %180 = arith.addf %171, %179 : vector<16x768xf32>
    %c0_42 = arith.constant 0 : index
    %c6144_43 = arith.constant 6144 : index
    %181 = vector.load %arg1[%c0_42, %c6144_43] : memref<16x9216xbf16, #tpu.memory_space<vmem>>, vector<16x768xbf16>
    %c0_44 = arith.constant 0 : index
    %c6912_45 = arith.constant 6912 : index
    %182 = vector.load %arg1[%c0_44, %c6912_45] : memref<16x9216xbf16, #tpu.memory_space<vmem>>, vector<16x768xbf16>
    %183 = vector.broadcast %137 : vector<16x1xbf16> to vector<16x768xbf16>
    %184 = arith.mulf %183, %181 : vector<16x768xbf16>
    %185 = vector.broadcast %139 : vector<16x1xbf16> to vector<16x768xbf16>
    %186 = arith.mulf %185, %182 : vector<16x768xbf16>
    %187 = arith.addf %184, %186 : vector<16x768xbf16>
    %188 = arith.extf %187 : vector<16x768xbf16> to vector<16x768xf32>
    %189 = arith.addf %180, %188 : vector<16x768xf32>
    %c0_46 = arith.constant 0 : index
    %c7680_47 = arith.constant 7680 : index
    %190 = vector.load %arg1[%c0_46, %c7680_47] : memref<16x9216xbf16, #tpu.memory_space<vmem>>, vector<16x768xbf16>
    %c0_48 = arith.constant 0 : index
    %c8448_49 = arith.constant 8448 : index
    %191 = vector.load %arg1[%c0_48, %c8448_49] : memref<16x9216xbf16, #tpu.memory_space<vmem>>, vector<16x768xbf16>
    %192 = vector.broadcast %141 : vector<16x1xbf16> to vector<16x768xbf16>
    %193 = arith.mulf %192, %190 : vector<16x768xbf16>
    %194 = vector.broadcast %143 : vector<16x1xbf16> to vector<16x768xbf16>
    %195 = arith.mulf %194, %191 : vector<16x768xbf16>
    %196 = arith.addf %193, %195 : vector<16x768xbf16>
    %197 = arith.extf %196 : vector<16x768xbf16> to vector<16x768xf32>
    %198 = arith.addf %189, %197 : vector<16x768xf32>
    %199 = arith.truncf %198 : vector<16x768xf32> to vector<16x768xbf16>
    %c0_50 = arith.constant 0 : index
    %c0_51 = arith.constant 0 : index
    %200 = vector.load %arg3[%c0_50, %c0_51] : memref<768x128xbf16, #tpu.memory_space<vmem>>, vector<768x128xbf16>
    %cst_52 = arith.constant dense<0.000000e+00> : vector<16x128xf32>
    %201 = tpu.matmul %199, %200, %cst_52 {dimension_numbers = #tpu.dot_dimension_numbers<[1], [0], [0], [1], [0, 0, 1, 1], [], []>} : vector<16x768xbf16>, vector<768x128xbf16>, vector<16x128xf32> -> vector<16x128xf32>
    %c0_53 = arith.constant 0 : index
    %c0_54 = arith.constant 0 : index
    %202 = vector.load %arg4[%c0_53, %c0_54] : memref<1x128xf32, #tpu.memory_space<vmem>>, vector<1x128xf32>
    %203 = vector.broadcast %202 : vector<1x128xf32> to vector<16x128xf32>
    %204 = arith.addf %201, %203 : vector<16x128xf32>
    %c0_55 = arith.constant 0 : index
    %c0_56 = arith.constant 0 : index
    %205 = vector.load %arg5[%c0_55, %c0_56] : memref<16x128xf32, #tpu.memory_space<vmem>>, vector<16x128xf32>
    tpu.vector_store %arg5[%c0_55, %c0_56], %204 {strides = array<i32>} : memref<16x128xf32, #tpu.memory_space<vmem>>, vector<16x128xf32>,
    return
  }
  func.func @transform_0(%arg0: i32) -> (i32, i32) {
    %c0_i32 = arith.constant 0 : i32
    %c0_i32_0 = arith.constant 0 : i32
    return %arg0, %c0_i32 : i32, i32
  }
  func.func @transform_1(%arg0: i32) -> (i32, i32) {
    %c0_i32 = arith.constant 0 : i32
    %c0_i32_0 = arith.constant 0 : i32
    %c0_i32_1 = arith.constant 0 : i32
    return %c0_i32, %c0_i32_0 : i32, i32
  }
  func.func @transform_2(%arg0: i32) -> (i32, i32) {
    %c0_i32 = arith.constant 0 : i32
    %c0_i32_0 = arith.constant 0 : i32
    %c0_i32_1 = arith.constant 0 : i32
    return %c0_i32, %c0_i32_0 : i32, i32
  }
  func.func @transform_3(%arg0: i32) -> (i32, i32) {
    %c0_i32 = arith.constant 0 : i32
    %c0_i32_0 = arith.constant 0 : i32
    %c0_i32_1 = arith.constant 0 : i32
    return %c0_i32, %c0_i32_0 : i32, i32
  }
  func.func @transform_4(%arg0: i32) -> (i32, i32) {
    %c0_i32 = arith.constant 0 : i32
    %c0_i32_0 = arith.constant 0 : i32
    return %arg0, %c0_i32 : i32, i32
  }
}

</mosaic_0001>

<bundles_post_ra>
// kernel: tpu_custom_call.1
= control target key start
LH: loop header
LB: loop body
LE: loop exit
PB: predicated region body
PF: predicated region fallthrough
CT: control target
= control target key end

     0   :  { %9 = vsyncpa [#allocation3], 0  ;;  %s3344_s0 = inlined_call_operand.hbm [shape: bf16[16,9216], index: 0, kind: input, shape index: {}]   ;;  %s3345_s1 = inlined_call_operand.hbm [shape: bf16[1,768], index: 1, kind: input, shape index: {}]   ;;  %s3346_s2 = inlined_call_operand.hbm [shape: bf16[768,128], index: 2, kind: input, shape index: {}]   ;;  %s3347_s3 = inlined_call_operand.vmem [shape: f32[1,128], index: 3, kind: input, shape index: {}]   ;;  %s3348_s4 = inlined_call_operand.hbm [shape: f32[16,128], index: 4, kind: output, shape index: {}]  }
   0x1   :  { %10 = vsyncpa [#allocation6], 0 }
   0x2   :  { %11 = vsyncpa [#allocation4], 0  ;;  %s2332_s15 = smov [#allocation5]   ;;  %s2333_s17 = smov [#allocation2]  }
   0x3   :  { %s30_s16 = sshll.u32 %s2332_s15, 4  ;;  %s17_s18 = sshll.u32 %s2333_s17, 4  ;;  %s31_s16 = int_to_ptr.vmem [resolvable:$true] %s30_s16  ;;  %s18_s18 = int_to_ptr.vmem [resolvable:$true] %s17_s18 }
   0x4   :  { %s2254_s19 = scalar_lea.vmem %s31_s16, 96  ;;  %p2259_p1 = scmp.lt.s32.totalorder %s31_s16, %s31_s16 }
   0x5   :  { %p2255_p0 = scmp.ne.s32.totalorder %s31_s16, %s2254_s19  ;;  %p2260_p2 = scmp.lt.s32.totalorder %s2254_s19, %s2254_s19 }
   0x7   :  { %p2261_p3 = por %p2260_p2, %p2259_p1 }
   0x9   :  { %p2262_p4 = pnand %p2261_p3, %p2255_p0 }
   0xb   :  { %2265 = shalt.err (!%p2262_p4)
}
   0xc   :  { %33 = dma.hbm_to_vmem [thread:$0]  %s3345_s1, 96, %s31_s16, [#allocation6]  }
   0xd   :  { %s2274_s22 = scalar_lea.vmem %s18_s18, 9216  ;;  %p2279_p6 = scmp.lt.s32.totalorder %s18_s18, %s18_s18 }
   0xe   :  { %p2275_p5 = scmp.ne.s32.totalorder %s18_s18, %s2274_s22  ;;  %p2280_p7 = scmp.lt.s32.totalorder %s2274_s22, %s2274_s22 }
  0x10   :  { %p2281_p8 = por %p2280_p7, %p2279_p6 }
  0x12   :  { %p2282_p9 = pnand %p2281_p8, %p2275_p5 }
  0x14   :  { %2285 = shalt.err (!%p2282_p9)
}
  0x15   :  { %s2334_s23 = smov 4608   ;;  %s2335_s24 = smov 288  }
  0x16   :  { %23 = dma.hbm_to_vmem [thread:$0]  %s3344_s0, 9216, %s18_s18, [#allocation3], %s2334_s23, %s2334_s23, %s2335_s24  }
  0x17   :  { %s2336_s27 = smov [#allocation7]  }
  0x18   :  { %s39_s28 = sshll.u32 %s2336_s27, 4  ;;  %s40_s28 = int_to_ptr.vmem [resolvable:$true] %s39_s28 }
  0x19   :  { %s2294_s29 = scalar_lea.vmem %s40_s28, 6144  ;;  %p2299_p11 = scmp.lt.s32.totalorder %s40_s28, %s40_s28 }
  0x1a   :  { %p2295_p10 = scmp.ne.s32.totalorder %s40_s28, %s2294_s29  ;;  %p2300_p12 = scmp.lt.s32.totalorder %s2294_s29, %s2294_s29 }
  0x1c   :  { %p2301_p13 = por %p2300_p12, %p2299_p11 }
  0x1e   :  { %p2302_p0 = pnand %p2301_p13, %p2295_p10 }
  0x20   :  { %2305 = shalt.err (!%p2302_p0)
}
  0x21   :  { %s2337_s1 = smov 64   ;;  %s2338_s30 = smov 4  }
  0x22   :  { %45 = dma.hbm_to_vmem [thread:$0]  %s3346_s2, 6144, %s40_s28, [#allocation6], %s2337_s1, %s2337_s1, %s2338_s30  }
  0x23   :  { %2326 = dma.done.wait [#allocation3], 9216  }
  0x24   :  { %2327 = vsyncadd [#allocation3], 4294958080 }
  0x25   :  { %2328 = dma.done.wait [#allocation6], 6240  }
  0x26   :  { %2329 = vsyncadd [#allocation6], 4294961056  ;;  %v70_v0 = vlaneseq  ;;  %v2339_v1 = vmov 1966171168   ;;  %v58_v6 = vld [vmem:[#allocation5] sm:$0x3f] }
  0x27   :  { %v68_v2 = vunpack.c.l.s4 %v2339_v1  ;;  %v66_v7 = vcombine.high %v58_v6, %v58_v6  ;;  %v2377_v9 = vld [vmem:[#allocation2 + $0x20] sm:$0xff]  ;;  %v2379_v14 = vld [vmem:[#allocation2 + $0x28] sm:$0xff]  ;;  %v2401_v34 = vld [vmem:[#allocation2 + $0x10] sm:$0xff]  ;;  %s2340_s7 = smov [#allocation8]  }
  0x28   :  { %v71_v3 = vshrl.u32 %v70_v0, 7  ;;  %3448 = vst [vmem:[#allocation12_spill] sm:$0xff] %v2377_v9  ;;  %3449 = vst [vmem:[#allocation13_spill] sm:$0xff] %v2379_v14  ;;  %v2381_v15 = vld [vmem:[#allocation2 + $0x140] sm:$0xff]  ;;  %v2383_v16 = vld [vmem:[#allocation2 + $0x148] sm:$0xff]  ;;  %s1916_s8 = sshll.u32 %s2340_s7, 4  ;;  %s1917_s8 = int_to_ptr.vmem [resolvable:$true] %s1916_s8 }
  0x29   :  { %v69_v4 = vunpack.c.0.s8 %v68_v2  ;;  %3450 = vst [vmem:[#allocation14_spill] sm:$0xff] %v2381_v15  ;;  %3451 = vst [vmem:[#allocation15_spill] sm:$0xff] %v2383_v16  ;;  %v2393_v25 = vld [vmem:[#allocation2 + $0x8] sm:$0xff]  ;;  %v2403_v35 = vld [vmem:[#allocation2 + $0x130] sm:$0xff]  ;;  %p2311_p2 = scmp.lt.s32.totalorder %s1917_s8, %s1917_s8 }
  0x2a   :  { %v118_v13 = vsub.s32 0, %v71_v3  ;;  %3452 = vst [vmem:[#allocation16_spill] sm:$0xff] %v2393_v25  ;;  %v2395_v26 = vld [vmem:[#allocation2 + $0x128] sm:$0xff]  ;;  %3454 = vst [vmem:[#allocation18_spill] sm:$0xff] %v2401_v34  ;;  %v205_v38 = vld [vmem:[#allocation2 + $0x18] sm:$0xff] }
  0x2b   :  { %v72_v5 = vsub.s32 %v69_v4, %v71_v3  ;;  %3453 = vst [vmem:[#allocation17_spill] sm:$0xff] %v2395_v26  ;;  %3455 = vst [vmem:[#allocation19_spill] sm:$0xff] %v2403_v35  ;;  %v59_v39 = vld [vmem:[#allocation2] sm:$0xff]  ;;  %v208_v46 = vld [vmem:[#allocation2 + $0x138] sm:$0xff] }
  0x2c   :  { %v2409_v47 = vld [vmem:[#allocation2 + $0x158] sm:$0xff]  ;;  %v62_v50 = vld [vmem:[#allocation2 + $0x120] sm:$0xff]  ;;  %v246_v58 = vld [vmem:[#allocation2 + $0x150] sm:$0xff] }
  0x2d   :  { %v73_v8 = vrot.slane %v58_v6, %v72_v5  ;;  %v80_v10 = vrot.slane %v66_v7, %v72_v5  ;;  %3456 = vst [vmem:[#allocation20_spill] sm:$0xff] %v2409_v47  ;;  %v2411_v48 = vld [vmem:[#allocation2 + $0x38] sm:$0xff]  ;;  %v2413_v51 = vld [vmem:[#allocation2 + $0x160] sm:$0xff]  ;;  %v2425_v60 = vld [vmem:[#allocation2 + $0x170] sm:$0xff] }
  0x2e   :  { %3457 = vst [vmem:[#allocation21_spill] sm:$0xff] %v2411_v48  ;;  %3458 = vst [vmem:[#allocation22_spill] sm:$0xff] %v2413_v51  ;;  %v2415_v52 = vld [vmem:[#allocation2 + $0x40] sm:$0xff]  ;;  %v2427_v61 = vld [vmem:[#allocation2 + $0x50] sm:$0xff] }
  0x2f   :  { %v81_v11 = vcombine.high %v73_v8, %v73_v8  ;;  %v89_v12 = vrot.slane %v73_v8, %v72_v5  ;;  %v82_v21 = vcombine.high %v80_v10, %v80_v10  ;;  %v96_v22 = vrot.slane %v80_v10, %v72_v5  ;;  %3459 = vst [vmem:[#allocation23_spill] sm:$0xff] %v2415_v52  ;;  %v243_v8 = vld [vmem:[#allocation2 + $0x30] sm:$0xff]  ;;  %v2517_v40 = vld [vmem:[#allocation2 + $0x80] sm:$0xff]  ;;  %v2539_v20 = vld [vmem:[#allocation2 + $0x1b8] sm:$0xff] }
  0x30   :  { %3460 = vst [vmem:[#allocation24_spill] sm:$0xff] %v2425_v60  ;;  %3461 = vst [vmem:[#allocation25_spill] sm:$0xff] %v2427_v61  ;;  %v398_v62 = vld [vmem:[#allocation2 + $0x1b0] sm:$0xff]  ;;  %v2572_v0 = vld [vmem:[#allocation2 + $0x1d8] sm:$0xff] }
  0x31   :  { %v103_v23 = vrot.slane %v81_v11, %v72_v5  ;;  %v111_v24 = vcombine.high %v89_v12, %v89_v12  ;;  %v114_v27 = vpack.i.b16 %v89_v12, %v89_v12  ;;  %v110_v30 = vrot.slane %v82_v21, %v72_v5  ;;  %3470 = vst [vmem:[#allocation34_spill] sm:$0xff] %v2517_v40 }
  0x32   :  { %v142_v37 = vpack.i.b16 %v96_v22, %v96_v22  ;;  %3472 = vst [vmem:[#allocation36_spill] sm:$0xff] %v2539_v20  ;;  %3478 = vst [vmem:[#allocation42_spill] sm:$0xff] %v2572_v0 }
  0x33   :  { %v112_v31 = vcombine.high %v103_v23, %v103_v23  ;;  %v121_v32 = vpack.i.b16 %v103_v23, %v103_v23  ;;  %v128_v33 = vpack.i.b16 %v111_v24, %v111_v24  ;;  %v119_v36 = vrot.slane %v114_v27, %v118_v13 }
  0x34   :  { %v149_v45 = vpack.i.b16 %v110_v30, %v110_v30  ;;  %v147_v49 = vrot.slane %v142_v37, %v118_v13 }
  0x35   :  { %v126_v42 = vrot.slane %v121_v32, %v118_v13  ;;  %v133_v43 = vrot.slane %v128_v33, %v118_v13  ;;  %v135_v44 = vpack.i.b16 %v112_v31, %v112_v31 }
  0x36   :  { %v154_v56 = vrot.slane %v149_v45, %v118_v13 }
  0x37   :  { %v140_v55 = vrot.slane %v135_v44, %v118_v13  ;;  %v2421_v57 = vcombine.low %v119_v36, %v126_v42 }
  0x38   :  { %v2437_v2 = vcombine.low %v147_v49, %v154_v56 }
  0x39   :  { %v2435_v1 = vcombine.low %v133_v43, %v140_v55  ;;  %v211_v3 = vmul.bf16 %v2421_v57, %v205_v38  ;;  %v173_v4 = vmul.bf16 %v2421_v57, %v59_v39  ;;  %v214_v5 = vmul.bf16 %v2421_v57, %v208_v46 }
  0x3a   :  { %v176_v6 = vmul.bf16 %v2421_v57, %v62_v50  ;;  %v2444_v7 = vmul.bf16 %v2421_v57, %v246_v58  ;;  %v213_v11 = vmul.bf16 %v2437_v2, %v2379_v14  ;;  %v175_v22 = vmul.bf16 %v2437_v2, %v2401_v34  ;;  %v2656_v14 = vld [vmem:[#allocation2 + $0x218] sm:$0xff] }
  0x3b   :  { %v212_v10 = vmul.bf16 %v2435_v1, %v2377_v9  ;;  %v217_v12 = vunpack.c.l.bf16 %v211_v3  ;;  %v218_v13 = vunpack.c.h.bf16 %v211_v3  ;;  %v174_v21 = vmul.bf16 %v2435_v1, %v2393_v25  ;;  %3492 = vst [vmem:[#allocation56_spill] sm:$0xff] %v2656_v14  ;;  %v2932_v9 = vld [vmem:[#allocation2 + $0x78] sm:$0xff] }
  0x3c   :  { %v179_v23 = vunpack.c.l.bf16 %v173_v4  ;;  %v180_v24 = vunpack.c.h.bf16 %v173_v4  ;;  %v221_v31 = vunpack.c.l.bf16 %v213_v11  ;;  %v2455_v32 = vmul.bf16 %v2421_v57, %v243_v8 }
  0x3d   :  { %v219_v27 = vunpack.c.l.bf16 %v212_v10  ;;  %v220_v30 = vunpack.c.h.bf16 %v212_v10  ;;  %v222_v33 = vunpack.c.h.bf16 %v213_v11  ;;  %v229_v36 = vadd.f32 %v218_v13, %v217_v12 }
  0x3e   :  { %v181_v37 = vunpack.c.l.bf16 %v174_v21  ;;  %v182_v38 = vunpack.c.h.bf16 %v174_v21  ;;  %v183_v39 = vunpack.c.l.bf16 %v175_v22  ;;  %v191_v42 = vadd.f32 %v180_v24, %v179_v23 }
  0x3f   :  { %v215_v43 = vmul.bf16 %v2435_v1, %v2381_v15  ;;  %v216_v44 = vmul.bf16 %v2437_v2, %v2383_v16  ;;  %v230_v45 = vadd.f32 %v229_v36, %v219_v27  ;;  %v223_v46 = vunpack.c.l.bf16 %v214_v5  ;;  %v2930_v15 = vld [vmem:[#allocation2 + $0x198] sm:$0xff] }
  0x40   :  { %v224_v49 = vunpack.c.h.bf16 %v214_v5  ;;  %v177_v50 = vmul.bf16 %v2435_v1, %v2395_v26  ;;  %v184_v55 = vunpack.c.h.bf16 %v175_v22  ;;  %v192_v56 = vadd.f32 %v191_v42, %v181_v37  ;;  %3503 = vst [vmem:[#allocation67_spill] sm:$0xff] %v2930_v15  ;;  %v2984_v15 = vld [vmem:[#allocation2 + $0x90] sm:$0xff] }
  0x41   :  { %v225_v58 = vunpack.c.l.bf16 %v215_v43  ;;  %v226_v3 = vunpack.c.h.bf16 %v215_v43  ;;  %v231_v4 = vadd.f32 %v230_v45, %v220_v30  ;;  %v227_v8 = vunpack.c.l.bf16 %v216_v44  ;;  %v284_v30 = vld [vmem:[#allocation2 + $0x168] sm:$0xff]  ;;  %3504 = vst [vmem:[#allocation68_spill] sm:$0xff] %v2984_v15 }
  0x42   :  { %v236_v10 = vadd.f32 %v224_v49, %v223_v46  ;;  %v178_v11 = vmul.bf16 %v2437_v2, %v2403_v35  ;;  %v193_v12 = vadd.f32 %v192_v56, %v182_v38  ;;  %v185_v13 = vunpack.c.l.bf16 %v176_v6  ;;  %v2658_v35 = vld [vmem:[#allocation2 + $0x220] sm:$0xff] }
  0x43   :  { %v186_v21 = vunpack.c.h.bf16 %v176_v6  ;;  %v187_v23 = vunpack.c.l.bf16 %v177_v50  ;;  %v232_v24 = vadd.f32 %v231_v4, %v221_v31  ;;  %v228_v27 = vunpack.c.h.bf16 %v216_v44  ;;  %3493 = vst [vmem:[#allocation57_spill] sm:$0xff] %v2658_v35 }
  0x44   :  { %v237_v5 = vadd.f32 %v236_v10, %v225_v58  ;;  %v188_v36 = vunpack.c.h.bf16 %v177_v50  ;;  %v194_v59 = vadd.f32 %v193_v12, %v183_v39  ;;  %v189_v19 = vunpack.c.l.bf16 %v178_v11  ;;  %v2471_v58 = vld [vmem:[#allocation2 + $0x178] sm:$0xff] }
  0x45   :  { %v198_v22 = vadd.f32 %v186_v21, %v185_v13  ;;  %v253_v37 = vmul.bf16 %v2435_v1, %v2409_v47  ;;  %v233_v42 = vadd.f32 %v232_v24, %v222_v33  ;;  %v254_v45 = vmul.bf16 %v2437_v2, %v2413_v51  ;;  %3462 = vst [vmem:[#allocation26_spill] sm:$0xff] %v2471_v58  ;;  %v2480_v24 = vld [vmem:[#allocation2 + $0x58] sm:$0xff]  ;;  %v2924_v47 = vld [vmem:[#allocation2 + $0x180] sm:$0xff] }
  0x46   :  { %v238_v43 = vadd.f32 %v237_v5, %v226_v3  ;;  %v261_v38 = vunpack.c.l.bf16 %v2444_v7  ;;  %v195_v6 = vadd.f32 %v194_v59, %v184_v55  ;;  %v262_v31 = vunpack.c.h.bf16 %v2444_v7  ;;  %3463 = vst [vmem:[#allocation27_spill] sm:$0xff] %v2480_v24 }
  0x47   :  { %v199_v46 = vadd.f32 %v198_v22, %v187_v23  ;;  %v263_v44 = vunpack.c.l.bf16 %v253_v37  ;;  %234 = vadd.xlane.f32.xlu1 %v233_v42  ;;  %v190_v49 = vunpack.c.h.bf16 %v178_v11  ;;  %v264_v50 = vunpack.c.h.bf16 %v253_v37  ;;  %v281_v11 = vld [vmem:[#allocation2 + $0x48] sm:$0xff] }
  0x48   :  { %v239_v39 = vadd.f32 %v238_v43, %v227_v8  ;;  %v265_v56 = vunpack.c.l.bf16 %v254_v45  ;;  %196 = vadd.xlane.f32.xlu0 %v195_v6  ;;  %v274_v3 = vadd.f32 %v262_v31, %v261_v38  ;;  %v250_v4 = vmul.bf16 %v2435_v1, %v2411_v48  ;;  %v2926_v48 = vld [vmem:[#allocation2 + $0x60] sm:$0xff] }
  0x49   :  { %v200_v33 = vadd.f32 %v199_v46, %v188_v36  ;;  %v251_v59 = vmul.bf16 %v2437_v2, %v2415_v52  ;;  %v255_v7 = vunpack.c.l.bf16 %v2455_v32  ;;  %v256_v10 = vunpack.c.h.bf16 %v2455_v32 }
  0x4a   :  { %v240_v55 = vadd.f32 %v239_v39, %v228_v27  ;;  %v290_v8 = vmul.bf16 %v2421_v57, %v284_v30  ;;  %v266_v13 = vunpack.c.h.bf16 %v254_v45  ;;  %v275_v21 = vadd.f32 %v274_v3, %v263_v44  ;;  %v322_v39 = vld [vmem:[#allocation2 + $0x180] sm:$0xff] }
  0x4b   :  { %v201_v12 = vadd.f32 %v200_v33, %v189_v19  ;;  %v257_v23 = vunpack.c.l.bf16 %v250_v4  ;;  %v258_v5 = vunpack.c.h.bf16 %v250_v4  ;;  %v259_v36 = vunpack.c.l.bf16 %v251_v59  ;;  %v2487_v33 = vld [vmem:[#allocation2 + $0x188] sm:$0xff] }
  0x4c   :  { %241 = vadd.xlane.f32.xlu1 %v240_v55  ;;  %v267_v22 = vadd.f32 %v256_v10, %v255_v7  ;;  %v291_v27 = vmul.bf16 %v2435_v1, %v2425_v60  ;;  %v276_v42 = vadd.f32 %v275_v21, %v264_v50  ;;  %v292_v32 = vmul.bf16 %v2437_v2, %v2471_v58  ;;  %v319_v55 = vld [vmem:[#allocation2 + $0x60] sm:$0xff]  ;;  %v2495_v7 = vld [vmem:[#allocation2 + $0x68] sm:$0xff] }
  0x4d   :  { %v202_v37 = vadd.f32 %v201_v12, %v190_v49  ;;  %v299_v30 = vunpack.c.l.bf16 %v290_v8  ;;  %v260_v43 = vunpack.c.h.bf16 %v251_v59  ;;  %v300_v45 = vunpack.c.h.bf16 %v290_v8  ;;  %3464 = vst [vmem:[#allocation28_spill] sm:$0xff] %v2487_v33  ;;  %v2493_v59 = vld [vmem:[#allocation2 + $0x190] sm:$0xff]  ;;  %3466 = vst [vmem:[#allocation30_spill] sm:$0xff] %v2495_v7  ;;  %v2626_v58 = vld [vmem:[#allocation2 + $0x200] sm:$0xff] }
  0x4e   :  { %v268_v19 = vadd.f32 %v267_v22, %v257_v23  ;;  %v301_v38 = vunpack.c.l.bf16 %v291_v27  ;;  %v277_v6 = vadd.f32 %v276_v42, %v265_v56  ;;  %v302_v46 = vunpack.c.h.bf16 %v291_v27  ;;  %3465 = vst [vmem:[#allocation29_spill] sm:$0xff] %v2493_v59  ;;  %v2523_v42 = vld [vmem:[#allocation2 + $0x88] sm:$0xff]  ;;  %3486 = vst [vmem:[#allocation50_spill] sm:$0xff] %v2626_v58 }
  0x4f   :  { %203 = vadd.xlane.f32.xlu0 %v202_v37  ;;  %v303_v31 = vunpack.c.l.bf16 %v292_v32  ;;  %v287_v44 = vmul.bf16 %v2421_v57, %v281_v11  ;;  %v312_v49 = vadd.f32 %v300_v45, %v299_v30  ;;  %v288_v50 = vmul.bf16 %v2435_v1, %v2427_v61  ;;  %v2501_v30 = vld [vmem:[#allocation2 + $0x70] sm:$0xff]  ;;  %v357_v11 = vld [vmem:[#allocation2 + $0x78] sm:$0xff]  ;;  %3471 = vst [vmem:[#allocation35_spill] sm:$0xff] %v2523_v42 }
  0x50   :  { %v269_v3 = vadd.f32 %v268_v19, %v258_v5  ;;  %v289_v4 = vmul.bf16 %v2437_v2, %v2480_v24  ;;  %v278_v56 = vadd.f32 %v277_v6, %v266_v13  ;;  %v304_v21 = vunpack.c.h.bf16 %v292_v32  ;;  %3467 = vst [vmem:[#allocation31_spill] sm:$0xff] %v2501_v30 }
  0x51   :  { %v293_v10 = vunpack.c.l.bf16 %v287_v44  ;;  %v294_v8 = vunpack.c.h.bf16 %v287_v44  ;;  %v313_v23 = vadd.f32 %v312_v49, %v301_v38  ;;  %v295_v5 = vunpack.c.l.bf16 %v288_v50 }
  0x52   :  { %v270_v12 = vadd.f32 %v269_v3, %v259_v36  ;;  %279 = vadd.xlane.f32.xlu1 %v278_v56  ;;  %v296_v22 = vunpack.c.h.bf16 %v288_v50  ;;  %v297_v27 = vunpack.c.l.bf16 %v289_v4  ;;  %v328_v45 = vmul.bf16 %v2421_v57, %v322_v39 }
  0x53   :  { %v305_v37 = vadd.f32 %v294_v8, %v293_v10  ;;  %v314_v13 = vadd.f32 %v313_v23, %v302_v46  ;;  %v329_v6 = vmul.bf16 %v2435_v1, %v2487_v33  ;;  %v330_v32 = vmul.bf16 %v2437_v2, %v2493_v59  ;;  %v360_v10 = vld [vmem:[#allocation2 + $0x198] sm:$0xff] }
  0x54   :  { %v271_v19 = vadd.f32 %v270_v12, %v260_v43  ;;  %v325_v38 = vmul.bf16 %v2421_v57, %v319_v55  ;;  %v326_v44 = vmul.bf16 %v2435_v1, %v2495_v7  ;;  %v337_v49 = vunpack.c.l.bf16 %v328_v45  ;;  %v2515_v55 = vld [vmem:[#allocation2 + $0x1a8] sm:$0xff] }
  0x55   :  { %v306_v36 = vadd.f32 %v305_v37, %v295_v5  ;;  %v315_v3 = vadd.f32 %v314_v13, %v303_v31  ;;  %v338_v50 = vunpack.c.h.bf16 %v328_v45  ;;  %v339_v43 = vunpack.c.l.bf16 %v329_v6  ;;  %v2513_v37 = vld [vmem:[#allocation2 + $0x1a0] sm:$0xff]  ;;  %3469 = vst [vmem:[#allocation33_spill] sm:$0xff] %v2515_v55 }
  0x56   :  { %272 = vadd.xlane.f32.xlu0 %v271_v19  ;;  %v298_v46 = vunpack.c.h.bf16 %v289_v4  ;;  %v340_v39 = vunpack.c.h.bf16 %v329_v6  ;;  %v327_v23 = vmul.bf16 %v2437_v2, %v2501_v30  ;;  %v331_v5 = vunpack.c.l.bf16 %v325_v38  ;;  %3468 = vst [vmem:[#allocation32_spill] sm:$0xff] %v2513_v37  ;;  %v2624_v30 = vld [vmem:[#allocation2 + $0x1f8] sm:$0xff] }
  0x57   :  { %v307_v56 = vadd.f32 %v306_v36, %v296_v22  ;;  %v316_v8 = vadd.f32 %v315_v3, %v304_v21  ;;  %v350_v12 = vadd.f32 %v338_v50, %v337_v49  ;;  %v341_v31 = vunpack.c.l.bf16 %v330_v32  ;;  %v2543_v49 = vld [vmem:[#allocation2 + $0x90] sm:$0xff]  ;;  %3485 = vst [vmem:[#allocation49_spill] sm:$0xff] %v2624_v30 }
  0x58   :  { %v332_v13 = vunpack.c.h.bf16 %v325_v38  ;;  %v333_v45 = vunpack.c.l.bf16 %v326_v44  ;;  %v342_v4 = vunpack.c.h.bf16 %v330_v32  ;;  %v334_v21 = vunpack.c.h.bf16 %v326_v44  ;;  %3474 = vst [vmem:[#allocation38_spill] sm:$0xff] %v2543_v49 }
  0x59   :  { %v308_v19 = vadd.f32 %v307_v56, %v297_v27  ;;  %317 = vadd.xlane.f32.xlu1 %v316_v8  ;;  %v351_v22 = vadd.f32 %v350_v12, %v339_v43  ;;  %v335_v6 = vunpack.c.l.bf16 %v327_v23  ;;  %v366_v44 = vmul.bf16 %v2421_v57, %v360_v10 }
  0x5a   :  { %v343_v3 = vadd.f32 %v332_v13, %v331_v5  ;;  %v368_v56 = vmul.bf16 %v2437_v2, %v2515_v55  ;;  %v363_v8 = vmul.bf16 %v2421_v57, %v357_v11  ;;  %v336_v13 = vunpack.c.h.bf16 %v327_v23  ;;  %v2541_v11 = vld [vmem:[#allocation2 + $0x1c0] sm:$0xff]  ;;  %v2545_v23 = vld [vmem:[#allocation2 + $0x98] sm:$0xff] }
  0x5b   :  { %v309_v36 = vadd.f32 %v308_v19, %v298_v46  ;;  %v352_v27 = vadd.f32 %v351_v22, %v340_v39  ;;  %v367_v46 = vmul.bf16 %v2435_v1, %v2513_v37  ;;  %v375_v39 = vunpack.c.l.bf16 %v366_v44  ;;  %3473 = vst [vmem:[#allocation37_spill] sm:$0xff] %v2541_v11  ;;  %3475 = vst [vmem:[#allocation39_spill] sm:$0xff] %v2545_v23 }
  0x5c   :  { %v344_v43 = vadd.f32 %v343_v3, %v333_v45  ;;  %v376_v5 = vunpack.c.h.bf16 %v366_v44  ;;  %v364_v19 = vmul.bf16 %v2435_v1, %v2517_v40  ;;  %v379_v45 = vunpack.c.l.bf16 %v368_v56 }
  0x5d   :  { %310 = vadd.xlane.f32.xlu0 %v309_v36  ;;  %v353_v12 = vadd.f32 %v352_v27, %v341_v31  ;;  %v377_v38 = vunpack.c.l.bf16 %v367_v46  ;;  %v378_v10 = vunpack.c.h.bf16 %v367_v46  ;;  %v365_v32 = vmul.bf16 %v2437_v2, %v2523_v42 }
  0x5e   :  { %v345_v22 = vadd.f32 %v344_v43, %v334_v21  ;;  %v388_v3 = vadd.f32 %v376_v5, %v375_v39  ;;  %v369_v27 = vunpack.c.l.bf16 %v363_v8  ;;  %v370_v44 = vunpack.c.h.bf16 %v363_v8  ;;  %v2547_v21 = vld [vmem:[#allocation2 + $0xa0] sm:$0xff] }
  0x5f   :  { %v354_v36 = vadd.f32 %v353_v12, %v342_v4  ;;  %v371_v41 = vunpack.c.l.bf16 %v364_v19  ;;  %3476 = vst [vmem:[#allocation40_spill] sm:$0xff] %v2547_v21  ;;  %v380_v4 = vunpack.c.h.bf16 %v368_v56  ;;  %v372_v46 = vunpack.c.h.bf16 %v364_v19 }
  0x60   :  { %v346_v31 = vadd.f32 %v345_v22, %v335_v6  ;;  %v389_v43 = vadd.f32 %v388_v3, %v377_v38  ;;  %v373_v12 = vunpack.c.l.bf16 %v365_v32  ;;  %v374_v5 = vunpack.c.h.bf16 %v365_v32 }
  0x61   :  { %355 = vadd.xlane.f32.xlu1 %v354_v36  ;;  %v381_v63 = vadd.f32 %v370_v44, %v369_v27  ;;  %v404_v56 = vmul.bf16 %v2421_v57, %v398_v62  ;;  %v405_v32 = vmul.bf16 %v2435_v1, %v2539_v20  ;;  %v406_v19 = vmul.bf16 %v2437_v2, %v2541_v11  ;;  %v2596_v11 = vld [vmem:[#allocation2 + $0x1e0] sm:$0xff]  ;;  %v2956_v20 = vld [vmem:[#allocation2 + $0x1b0] sm:$0xff] }
  0x62   :  { %v347_v39 = vadd.f32 %v346_v31, %v336_v13  ;;  %v390_v22 = vadd.f32 %v389_v43, %v378_v10  ;;  %v401_v10 = vmul.bf16 %v2421_v57, %v2543_v49  ;;  %v402_v3 = vmul.bf16 %v2435_v1, %v2545_v23  ;;  %3480 = vst [vmem:[#allocation44_spill] sm:$0xff] %v2596_v11 }
  0x63   :  { %v382_v38 = vadd.f32 %v381_v63, %v371_v41  ;;  %v403_v31 = vmul.bf16 %v2437_v2, %v2547_v21  ;;  %v413_v41 = vunpack.c.l.bf16 %v404_v56  ;;  %v414_v63 = vunpack.c.h.bf16 %v404_v56 }
  0x64   :  { %348 = vadd.xlane.f32.xlu0 %v347_v39  ;;  %v391_v13 = vadd.f32 %v390_v22, %v379_v45  ;;  %v415_v62 = vunpack.c.l.bf16 %v405_v32  ;;  %v416_v43 = vunpack.c.h.bf16 %v405_v32  ;;  %v407_v36 = vunpack.c.l.bf16 %v401_v10  ;;  %v2568_v45 = vld [vmem:[#allocation2 + $0x1c8] sm:$0xff]  ;;  %v2570_v22 = vld [vmem:[#allocation2 + $0x1d0] sm:$0xff] }
  0x65   :  { %v383_v27 = vadd.f32 %v382_v38, %v372_v46  ;;  %v426_v53 = vadd.f32 %v414_v63, %v413_v41  ;;  %v408_v6 = vunpack.c.h.bf16 %v401_v10  ;;  %3477 = vst [vmem:[#allocation41_spill] sm:$0xff] %v2570_v22  ;;  %v417_v17 = vunpack.c.l.bf16 %v406_v19  ;;  %v2574_v46 = vld [vmem:[#allocation2 + $0xa8] sm:$0xff] }
  0x66   :  { %v392_v44 = vadd.f32 %v391_v13, %v380_v4  ;;  %v418_v28 = vunpack.c.h.bf16 %v406_v19  ;;  %v409_v8 = vunpack.c.l.bf16 %v402_v3  ;;  %v410_v50 = vunpack.c.h.bf16 %v402_v3 }
  0x67   :  { %v384_v39 = vadd.f32 %v383_v27, %v373_v12  ;;  %v427_v4 = vadd.f32 %v426_v53, %v415_v62  ;;  %v411_v56 = vunpack.c.l.bf16 %v403_v31  ;;  %v419_v12 = vadd.f32 %v408_v6, %v407_v36  ;;  %v2588_v6 = vld [vmem:[#allocation2 + $0xb8] sm:$0xff] }
  0x68   :  { %393 = vadd.xlane.f32.xlu1 %v392_v44  ;;  %v442_v10 = vmul.bf16 %v2421_v57, %v2568_v45  ;;  %v443_v19 = vmul.bf16 %v2435_v1, %v2570_v22  ;;  %v444_v53 = vmul.bf16 %v2437_v2, %v2572_v0  ;;  %3479 = vst [vmem:[#allocation43_spill] sm:$0xff] %v2588_v6 }
  0x69   :  { %v385_v38 = vadd.f32 %v384_v39, %v374_v5  ;;  %v428_v3 = vadd.f32 %v427_v4, %v416_v43  ;;  %v420_v27 = vadd.f32 %v419_v12, %v409_v8  ;;  %v2586_v5 = vld [vmem:[#allocation2 + $0xb0] sm:$0xff]  ;;  %v439_v36 = vmul.bf16 %v2421_v57, %v2574_v46 }
  0x6a   :  { %v451_v41 = vunpack.c.l.bf16 %v442_v10  ;;  %v452_v63 = vunpack.c.h.bf16 %v442_v10  ;;  %v453_v62 = vunpack.c.l.bf16 %v443_v19  ;;  %v412_v39 = vunpack.c.h.bf16 %v403_v31  ;;  %v2598_v10 = vld [vmem:[#allocation2 + $0x1e8] sm:$0xff] }
  0x6b   :  { %386 = vadd.xlane.f32.xlu0 %v385_v38  ;;  %v429_v44 = vadd.f32 %v428_v3, %v417_v17  ;;  %v421_v32 = vadd.f32 %v420_v27, %v410_v50  ;;  %v454_v13 = vunpack.c.h.bf16 %v443_v19  ;;  %v440_v8 = vmul.bf16 %v2435_v1, %v2586_v5  ;;  %3481 = vst [vmem:[#allocation45_spill] sm:$0xff] %v2598_v10  ;;  %v2600_v3 = vld [vmem:[#allocation2 + $0x1f0] sm:$0xff]  ;;  %v2602_v27 = vld [vmem:[#allocation2 + $0xc0] sm:$0xff] }
  0x6c   :  { %v464_v38 = vadd.f32 %v452_v63, %v451_v41  ;;  %v441_v43 = vmul.bf16 %v2437_v2, %v2588_v6  ;;  %v445_v4 = vunpack.c.l.bf16 %v439_v36  ;;  %v455_v18 = vunpack.c.l.bf16 %v444_v53  ;;  %3482 = vst [vmem:[#allocation46_spill] sm:$0xff] %v2600_v3  ;;  %3483 = vst [vmem:[#allocation47_spill] sm:$0xff] %v2602_v27  ;;  %v2604_v41 = vld [vmem:[#allocation2 + $0xc8] sm:$0xff] }
  0x6d   :  { %v430_v12 = vadd.f32 %v429_v44, %v418_v28  ;;  %v422_v54 = vadd.f32 %v421_v32, %v411_v56  ;;  %v446_v29 = vunpack.c.h.bf16 %v439_v36  ;;  %v456_v17 = vunpack.c.h.bf16 %v444_v53 }
  0x6e   :  { %v465_v31 = vadd.f32 %v464_v38, %v453_v62  ;;  %v447_v50 = vunpack.c.l.bf16 %v440_v8  ;;  %v448_v19 = vunpack.c.h.bf16 %v440_v8  ;;  %v449_v28 = vunpack.c.l.bf16 %v441_v43 }
  0x6f   :  { %431 = vadd.xlane.f32.xlu1 %v430_v12  ;;  %v423_v63 = vadd.f32 %v422_v54, %v412_v39  ;;  %v457_v56 = vadd.f32 %v446_v29, %v445_v4  ;;  %v480_v62 = vmul.bf16 %v2421_v57, %v2596_v11  ;;  %v481_v44 = vmul.bf16 %v2435_v1, %v2598_v10  ;;  %v2616_v39 = vld [vmem:[#allocation2 + $0xd0] sm:$0xff] }
  0x70   :  { %v466_v36 = vadd.f32 %v465_v31, %v454_v13  ;;  %v482_v54 = vmul.bf16 %v2437_v2, %v2600_v3  ;;  %3484 = vst [vmem:[#allocation48_spill] sm:$0xff] %v2616_v39  ;;  %v477_v29 = vmul.bf16 %v2421_v57, %v2602_v27  ;;  %v478_v13 = vmul.bf16 %v2435_v1, %v2604_v41 }
  0x71   :  { %424 = vadd.xlane.f32.xlu0 %v423_v63  ;;  %v458_v38 = vadd.f32 %v457_v56, %v447_v50  ;;  %v489_v4 = vunpack.c.l.bf16 %v480_v62  ;;  %v490_v12 = vunpack.c.h.bf16 %v480_v62  ;;  %v491_v31 = vunpack.c.l.bf16 %v481_v44  ;;  %v2630_v62 = vld [vmem:[#allocation2 + $0xd8] sm:$0xff] }
  0x72   :  { %v467_v8 = vadd.f32 %v466_v36, %v455_v18  ;;  %v450_v32 = vunpack.c.h.bf16 %v441_v43  ;;  %v492_v0 = vunpack.c.h.bf16 %v481_v44  ;;  %v479_v56 = vmul.bf16 %v2437_v2, %v2616_v39  ;;  %v2628_v18 = vld [vmem:[#allocation2 + $0x208] sm:$0xff]  ;;  %3488 = vst [vmem:[#allocation52_spill] sm:$0xff] %v2630_v62  ;;  %v2632_v44 = vld [vmem:[#allocation2 + $0xe0] sm:$0xff]  ;;  %v2654_v39 = vld [vmem:[#allocation2 + $0x210] sm:$0xff] }
  0x73   :  { %v459_v53 = vadd.f32 %v458_v38, %v448_v19  ;;  %v502_v50 = vadd.f32 %v490_v12, %v489_v4  ;;  %v483_v6 = vunpack.c.l.bf16 %v477_v29  ;;  %v493_v55 = vunpack.c.l.bf16 %v482_v54  ;;  %3487 = vst [vmem:[#allocation51_spill] sm:$0xff] %v2628_v18  ;;  %3489 = vst [vmem:[#allocation53_spill] sm:$0xff] %v2632_v44  ;;  %v2634_v38 = vld [vmem:[#allocation2 + $0xe8] sm:$0xff] }
  0x74   :  { %v468_v63 = vadd.f32 %v467_v8, %v456_v17  ;;  %v484_v42 = vunpack.c.h.bf16 %v477_v29  ;;  %v485_v59 = vunpack.c.l.bf16 %v478_v13  ;;  %v494_v43 = vunpack.c.h.bf16 %v482_v54  ;;  %3490 = vst [vmem:[#allocation54_spill] sm:$0xff] %v2634_v38  ;;  %3491 = vst [vmem:[#allocation55_spill] sm:$0xff] %v2654_v39 }
  0x75   :  { %v460_v21 = vadd.f32 %v459_v53, %v449_v28  ;;  %v503_v19 = vadd.f32 %v502_v50, %v491_v31  ;;  %v486_v36 = vunpack.c.h.bf16 %v478_v13  ;;  %v487_v17 = vunpack.c.l.bf16 %v479_v56 }
  0x76   :  { %469 = vadd.xlane.f32.xlu1 %v468_v63  ;;  %v495_v53 = vadd.f32 %v484_v42, %v483_v6  ;;  %v518_v54 = vmul.bf16 %v2421_v57, %v2624_v30  ;;  %v519_v13 = vmul.bf16 %v2435_v1, %v2626_v58  ;;  %v520_v12 = vmul.bf16 %v2437_v2, %v2628_v18  ;;  %v2684_v18 = vld [vmem:[#allocation2 + $0x228] sm:$0xff] }
  0x77   :  { %v461_v28 = vadd.f32 %v460_v21, %v450_v32  ;;  %v504_v4 = vadd.f32 %v503_v19, %v492_v0  ;;  %v515_v42 = vmul.bf16 %v2421_v57, %v2630_v62  ;;  %v516_v21 = vmul.bf16 %v2435_v1, %v2632_v44  ;;  %3496 = vst [vmem:[#allocation60_spill] sm:$0xff] %v2684_v18 }
  0x78   :  { %v496_v31 = vadd.f32 %v495_v53, %v485_v59  ;;  %v2652_v0 = vmul.bf16 %v2437_v2, %v2634_v38  ;;  %v527_v32 = vunpack.c.l.bf16 %v518_v54  ;;  %v528_v63 = vunpack.c.h.bf16 %v518_v54  ;;  %v2663_v54 = vld [vmem:[#allocation2 + $0xf8] sm:$0xff]  ;;  %v2686_v38 = vld [vmem:[#allocation2 + $0x230] sm:$0xff] }
  0x79   :  { %462 = vadd.xlane.f32.xlu0 %v461_v28  ;;  %v505_v6 = vadd.f32 %v504_v4, %v493_v55  ;;  %v529_v50 = vunpack.c.l.bf16 %v519_v13  ;;  %v488_v19 = vunpack.c.h.bf16 %v479_v56  ;;  %v530_v8 = vunpack.c.h.bf16 %v519_v13  ;;  %3497 = vst [vmem:[#allocation61_spill] sm:$0xff] %v2686_v38 }
  0x7a   :  { %v497_v29 = vadd.f32 %v496_v31, %v486_v36  ;;  %v540_v28 = vadd.f32 %v528_v63, %v527_v32  ;;  %v521_v59 = vunpack.c.l.bf16 %v515_v42  ;;  %v522_v53 = vunpack.c.h.bf16 %v515_v42 }
  0x7b   :  { %v506_v3 = vadd.f32 %v505_v6, %v494_v43  ;;  %v531_v51 = vunpack.c.l.bf16 %v520_v12  ;;  %v532_v52 = vunpack.c.h.bf16 %v520_v12  ;;  %v523_v16 = vunpack.c.l.bf16 %v516_v21  ;;  %v2661_v43 = vld [vmem:[#allocation2 + $0xf0] sm:$0xff]  ;;  %v2675_v6 = vld [vmem:[#allocation2 + $0x100] sm:$0xff] }
  0x7c   :  { %v498_v24 = vadd.f32 %v497_v29, %v487_v17  ;;  %v541_v55 = vadd.f32 %v540_v28, %v529_v50  ;;  %v524_v4 = vunpack.c.h.bf16 %v516_v21  ;;  %v525_v56 = vunpack.c.l.bf16 %v2652_v0  ;;  %3494 = vst [vmem:[#allocation58_spill] sm:$0xff] %v2661_v43  ;;  %3495 = vst [vmem:[#allocation59_spill] sm:$0xff] %v2675_v6 }
  0x7d   :  { %507 = vadd.xlane.f32.xlu1 %v506_v3  ;;  %v533_v36 = vadd.f32 %v522_v53, %v521_v59  ;;  %v556_v12 = vmul.bf16 %v2421_v57, %v2654_v39  ;;  %v557_v42 = vmul.bf16 %v2435_v1, %v2656_v14  ;;  %v558_v21 = vmul.bf16 %v2437_v2, %v2658_v35 }
  0x7e   :  { %v499_v13 = vadd.f32 %v498_v24, %v488_v19  ;;  %v542_v3 = vadd.f32 %v541_v55, %v530_v8  ;;  %v553_v63 = vmul.bf16 %v2421_v57, %v2661_v43  ;;  %v554_v50 = vmul.bf16 %v2435_v1, %v2663_v54 }
  0x7f   :  { %v534_v31 = vadd.f32 %v533_v36, %v523_v16  ;;  %v565_v24 = vunpack.c.l.bf16 %v556_v12  ;;  %v566_v32 = vunpack.c.h.bf16 %v556_v12  ;;  %v526_v16 = vunpack.c.h.bf16 %v2652_v0 }
  0x80   :  { %500 = vadd.xlane.f32.xlu0 %v499_v13  ;;  %v543_v19 = vadd.f32 %v542_v3, %v531_v51  ;;  %v567_v28 = vunpack.c.l.bf16 %v557_v42  ;;  %v568_v59 = vunpack.c.h.bf16 %v557_v42  ;;  %v569_v53 = vunpack.c.l.bf16 %v558_v21  ;;  %v2692_v42 = vld [vmem:[#allocation2 + $0x110] sm:$0xff] }
  0x81   :  { %v535_v8 = vadd.f32 %v534_v31, %v524_v4  ;;  %v578_v55 = vadd.f32 %v566_v32, %v565_v24  ;;  %v555_v36 = vmul.bf16 %v2437_v2, %v2675_v6  ;;  %v559_v12 = vunpack.c.l.bf16 %v553_v63  ;;  %v2688_v4 = vld [vmem:[#allocation2 + $0x238] sm:$0xff]  ;;  %v2690_v31 = vld [vmem:[#allocation2 + $0x108] sm:$0xff] }
  0x82   :  { %v544_v13 = vadd.f32 %v543_v19, %v532_v52  ;;  %v560_v29 = vunpack.c.h.bf16 %v553_v63  ;;  %v570_v34 = vunpack.c.h.bf16 %v558_v21  ;;  %v561_v3 = vunpack.c.l.bf16 %v554_v50  ;;  %3498 = vst [vmem:[#allocation62_spill] sm:$0xff] %v2688_v4  ;;  %3499 = vst [vmem:[#allocation63_spill] sm:$0xff] %v2690_v31 }
  0x83   :  { %v536_v17 = vadd.f32 %v535_v8, %v525_v56  ;;  %v579_v51 = vadd.f32 %v578_v55, %v567_v28  ;;  %v562_v0 = vunpack.c.h.bf16 %v554_v50  ;;  %v563_v52 = vunpack.c.l.bf16 %v555_v36 }
  0x84   :  { %545 = vadd.xlane.f32.xlu1 %v544_v13  ;;  %v571_v56 = vadd.f32 %v560_v29, %v559_v12  ;;  %v594_v50 = vmul.bf16 %v2421_v57, %v2684_v18  ;;  %v595_v19 = vmul.bf16 %v2435_v1, %v2686_v38  ;;  %v591_v29 = vmul.bf16 %v2421_v57, %v2690_v31  ;;  %v2708_v12 = vld [vmem:[#allocation2 + $0x118] sm:$0xff] }
  0x85   :  { %v537_v24 = vadd.f32 %v536_v17, %v526_v16  ;;  %v580_v63 = vadd.f32 %v579_v51, %v568_v59  ;;  %v596_v17 = vmul.bf16 %v2437_v2, %v2688_v4  ;;  %v592_v16 = vmul.bf16 %v2435_v1, %v2692_v42  ;;  %3500 = vst [vmem:[#allocation64_spill] sm:$0xff] %v2708_v12 }
  0x86   :  { %v572_v8 = vadd.f32 %v571_v56, %v561_v3  ;;  %v603_v59 = vunpack.c.l.bf16 %v594_v50  ;;  %v604_v55 = vunpack.c.h.bf16 %v594_v50  ;;  %v605_v13 = vunpack.c.l.bf16 %v595_v19 }
  0x87   :  { %538 = vadd.xlane.f32.xlu0 %v537_v24  ;;  %v581_v28 = vadd.f32 %v580_v63, %v569_v53  ;;  %v564_v51 = vunpack.c.h.bf16 %v555_v36  ;;  %v606_v24 = vunpack.c.h.bf16 %v595_v19  ;;  %v597_v56 = vunpack.c.l.bf16 %v591_v29 }
  0x88   :  { %v573_v32 = vadd.f32 %v572_v8, %v562_v0  ;;  %v616_v3 = vadd.f32 %v604_v55, %v603_v59  ;;  %v593_v6 = vmul.bf16 %v2437_v2, %v2708_v12  ;;  %v598_v57 = vunpack.c.h.bf16 %v591_v29 }
  0x89   :  { %v582_v21 = vadd.f32 %v581_v28, %v570_v34  ;;  %v599_v37 = vunpack.c.l.bf16 %v592_v16  ;;  %v607_v1 = vunpack.c.l.bf16 %v596_v17  ;;  %v600_v40 = vunpack.c.h.bf16 %v592_v16 }
  0x8a   :  { %v574_v35 = vadd.f32 %v573_v32, %v563_v52  ;;  %v617_v53 = vadd.f32 %v616_v3, %v605_v13  ;;  %v609_v36 = vadd.f32 %v598_v57, %v597_v56  ;;  %v608_v0 = vunpack.c.h.bf16 %v596_v17  ;;  %v2131_v13 = vld [vmem:[#allocation7 + $0x78] sm:$0xff]   ;;  %v2138_v3 = vld [vmem:[#allocation7 + $0xb0] sm:$0xff]   ;;  %v2139_v56 = vld [vmem:[#allocation7 + $0x68] sm:$0xff]  }
  0x8b   :  { %583 = vadd.xlane.f32.xlu1 %v582_v21  ;;  %v601_v52 = vunpack.c.l.bf16 %v593_v6  ;;  %v602_v8 = vunpack.c.h.bf16 %v593_v6  ;;  %v2132_v17 = vld [vmem:[#allocation7 + $0x38] sm:$0xff]   ;;  %2053 = vmatprep.subr.bf16.mxu0 %v2131_v13  ;;  %v2137_v6 = vld [vmem:[#allocation7 + $0xf0] sm:$0xff]  }
  0x8c   :  { %v575_v50 = vadd.f32 %v574_v35, %v564_v51  ;;  %v618_v19 = vadd.f32 %v617_v53, %v606_v24  ;;  %v610_v32 = vadd.f32 %v609_v36, %v599_v37  ;;  %v2133_v51 = vld [vmem:[#allocation7 + $0xf8] sm:$0xff]   ;;  %2054 = vmatpush3.bf16.msra.mxu0 %v2132_v17  ;;  %v2136_v37 = vld [vmem:[#allocation7 + $0x30] sm:$0xff]   ;;  %v2141_v53 = vld [vmem:[#allocation7 + $0xe8] sm:$0xff]  }
  0x8d   :  { %v2134_v24 = vld [vmem:[#allocation7 + $0xb8] sm:$0xff]   ;;  %2075 = vmatprep.subr.bf16.mxu1 %v2133_v51  ;;  %v2142_v36 = vld [vmem:[#allocation7 + $0xa8] sm:$0xff]   ;;  %v2151_v13 = vld [vmem:[#allocation7 + $0x50] sm:$0xff]  }
  0x8e   :  { %576 = vadd.xlane.f32.xlu0 %v575_v50  ;;  %v619_v2 = vadd.f32 %v618_v19, %v607_v1  ;;  %v611_v29 = vadd.f32 %v610_v32, %v600_v40  ;;  %2076 = vmatpush3.bf16.msra.mxu1 %v2134_v24  ;;  %v2135_v40 = vld [vmem:[#allocation7 + $0x70] sm:$0xff]   ;;  %v2140_v50 = vld [vmem:[#allocation7 + $0x28] sm:$0xff]   ;;  %v2145_v19 = vld [vmem:[#allocation7 + $0xe0] sm:$0xff]  }
  0x8f   :  { %2055 = vmatprep.subr.bf16.mxu0 %v2135_v40  ;;  %2077 = vmatprep.subr.bf16.mxu1 %v2137_v6  ;;  %v2153_v17 = vld [vmem:[#allocation7 + $0xd0] sm:$0xff]   ;;  %v2155_v6 = vld [vmem:[#allocation7 + $0x48] sm:$0xff]  }
  0x90   :  { %v620_v21 = vadd.f32 %v619_v2, %v608_v0  ;;  %v612_v28 = vadd.f32 %v611_v29, %v601_v52  ;;  %2056 = vmatpush3.bf16.msra.mxu0 %v2136_v37  ;;  %v2143_v0 = vld [vmem:[#allocation7 + $0x60] sm:$0xff]   ;;  %v2147_v29 = vld [vmem:[#allocation7 + $0x58] sm:$0xff]   ;;  %v2152_v40 = vld [vmem:[#allocation7 + $0x10] sm:$0xff]  }
  0x91   :  { %2057 = vmatprep.subr.bf16.mxu0 %v2139_v56  ;;  %v2144_v52 = vld [vmem:[#allocation7 + $0x20] sm:$0xff]   ;;  %v2154_v37 = vld [vmem:[#allocation7 + $0x90] sm:$0xff]   ;;  %v2156_v56 = vld [vmem:[#allocation7 + $0x8] sm:$0xff]  }
  0x92   :  { %621 = vadd.xlane.f32.xlu1 %v620_v21  ;;  %v613_v59 = vadd.f32 %v612_v28, %v602_v8  ;;  %2078 = vmatpush3.bf16.msra.mxu1 %v2138_v3  ;;  %v2146_v8 = vld [vmem:[#allocation7 + $0xa0] sm:$0xff]   ;;  %v2149_v21 = vld [vmem:[#allocation7 + $0xd8] sm:$0xff]   ;;  %v2157_v3 = vld [vmem:[#allocation7 + $0xc8] sm:$0xff]  }
  0x93   :  { %2079 = vmatprep.subr.bf16.mxu1 %v2141_v53  ;;  %v2148_v28 = vld [vmem:[#allocation7 + $0x18] sm:$0xff]  }
  0x94   :  { %614 = vadd.xlane.f32.xlu0 %v613_v59  ;;  %2058 = vmatpush3.bf16.msra.mxu0 %v2140_v50  ;;  %v2150_v59 = vld [vmem:[#allocation7 + $0x98] sm:$0xff]  }
  0x95   :  { %2059 = vmatprep.subr.bf16.mxu0 %v2143_v0  ;;  %v2159_v0 = vld [vmem:[#allocation7 + $0x40] sm:$0xff]  }
  0x96   :  { %2080 = vmatpush3.bf16.msra.mxu1 %v2142_v36  ;;  %v2158_v36 = vld [vmem:[#allocation7 + $0x88] sm:$0xff]  }
  0x97   :  { %2081 = vmatprep.subr.bf16.mxu1 %v2145_v19  ;;  %v2161_v19 = vld [vmem:[#allocation7 + $0xc0] sm:$0xff]  }
  0x98   :  { %2060 = vmatpush3.bf16.msra.mxu0 %v2144_v52  ;;  %v2160_v52 = vld [vmem:[#allocation7] sm:$0xff]  }
  0x99   :  { %2061 = vmatprep.subr.bf16.mxu0 %v2147_v29 }
  0x9a   :  { %2082 = vmatpush3.bf16.msra.mxu1 %v2146_v8  ;;  %v2162_v8 = vld [vmem:[#allocation7 + $0x80] sm:$0xff]  }
  0x9b   :  { %2083 = vmatprep.subr.bf16.mxu1 %v2149_v21 }
  0x9c   :  { %2062 = vmatpush3.bf16.msra.mxu0 %v2148_v28  ;;  %v2163_v28 = vld [vmem:[#allocation7 + $0x178] sm:$0xff]  }
  0x9d   :  { %2063 = vmatprep.subr.bf16.mxu0 %v2151_v13 }
  0x9e   :  { %2084 = vmatpush3.bf16.msra.mxu1 %v2150_v59 }
  0x9f   :  { %2085 = vmatprep.subr.bf16.mxu1 %v2153_v17 }
  0xa0   :  { %2064 = vmatpush3.bf16.msra.mxu0 %v2152_v40 }
  0xa1   :  { %2065 = vmatprep.subr.bf16.mxu0 %v2155_v6 }
  0xa2   :  { %2086 = vmatpush3.bf16.msra.mxu1 %v2154_v37 }
  0xa3   :  { %2087 = vmatprep.subr.bf16.mxu1 %v2157_v3 }
  0xa4   :  { %2066 = vmatpush3.bf16.msra.mxu0 %v2156_v56 }
  0xa5   :  { %2067 = vmatprep.subr.bf16.mxu0 %v2159_v0 }
  0xa6   :  { %2088 = vmatpush3.bf16.msra.mxu1 %v2158_v36 }
  0xa7   :  { %2089 = vmatprep.subr.bf16.mxu1 %v2161_v19 }
  0xa8   :  { %2068 = vmatpush3.bf16.msra.mxu0 %v2160_v52 }
  0xa9   :  { %2097 = vmatprep.subr.bf16.mxu0 %v2163_v28 }
  0xaa   :  { %2090 = vmatpush3.bf16.msra.mxu1 %v2162_v8 }
  0xd0   :  { %v2716_v55 = vpop.xlane.xlu1 %234 }
  0xd1   :  { %v2718_v35 = vpop.xlane.xlu0 %196 }
  0xd2   :  { %v623_v19 = vmax.f32 %v2718_v35, %v2716_v55 }
  0xd5   :  { %v2720_v16 = vpop.xlane.xlu1 %241 }
  0xd8   :  { %v2722_v57 = vpop.xlane.xlu0 %203 }
  0xd9   :  { %v624_v17 = vmax.f32 %v2722_v57, %v2720_v16 }
  0xdb   :  { %v2724_v1 = vpop.xlane.xlu1 %279 }
  0xdc   :  { %v626_v6 = vmax.f32 %v624_v17, %v2724_v1 }
  0xdf   :  { %v2726_v32 = vpop.xlane.xlu0 %272 }
  0xe0   :  { %v625_v8 = vmax.f32 %v623_v19, %v2726_v32 }
  0xe2   :  { %v2728_v2 = vpop.xlane.xlu1 %317 }
  0xe3   :  { %v628_v3 = vmax.f32 %v626_v6, %v2728_v2 }
  0xe6   :  { %v2730_v51 = vpop.xlane.xlu0 %310 }
  0xe7   :  { %v627_v63 = vmax.f32 %v625_v8, %v2730_v51 }
  0xea   :  { %v2732_v24 = vpop.xlane.xlu1 %355 }
  0xeb   :  { %v630_v56 = vmax.f32 %v628_v3, %v2732_v24 }
  0xed   :  { %v2734_v53 = vpop.xlane.xlu0 %348 }
  0xee   :  { %v629_v3 = vmax.f32 %v627_v63, %v2734_v53 }
  0xf1   :  { %v2736_v50 = vpop.xlane.xlu1 %393 }
  0xf2   :  { %v632_v52 = vmax.f32 %v630_v56, %v2736_v50 }
  0xf4   :  { %v2738_v29 = vpop.xlane.xlu0 %386 }
  0xf5   :  { %v631_v12 = vmax.f32 %v629_v3, %v2738_v29 }
  0xf8   :  { %v432_v21 = vpop.xlane.xlu1 %431 }
  0xf9   :  { %v634_v28 = vmax.f32 %v632_v52, %v432_v21 }
  0xfa   :  { %v2740_v59 = vpop.xlane.xlu0 %424 }
  0xfb   :  { %v633_v7 = vmax.f32 %v631_v12, %v2740_v59 }
  0xff   :  { %v470_v13 = vpop.xlane.xlu1 %469 }
 0x100   :  { %v636_v34 = vmax.f32 %v634_v28, %v470_v13 }
 0x102   :  { %v2744_v40 = vpop.xlane.xlu0 %462 }
 0x103   :  { %v635_v8 = vmax.f32 %v633_v7, %v2744_v40 }
 0x106   :  { %v508_v37 = vpop.xlane.xlu1 %507 }
 0x107   :  { %v638_v4 = vmax.f32 %v636_v34, %v508_v37 }
 0x109   :  { %v2749_v36 = vpop.xlane.xlu0 %500 }
 0x10a   :  { %v637_v63 = vmax.f32 %v635_v8, %v2749_v36 }
 0x10d   :  { %v2751_v0 = vpop.xlane.xlu1 %545 }
 0x10e   :  { %v640_v33 = vmax.f32 %v638_v4, %v2751_v0 }
 0x110   :  { %v2758_v17 = vpop.xlane.xlu0 %538 }
 0x111   :  { %v639_v3 = vmax.f32 %v637_v63, %v2758_v17 }
 0x114   :  { %v2760_v6 = vpop.xlane.xlu1 %583 }
 0x115   :  { %v642_v56 = vmax.f32 %v640_v33, %v2760_v6 }
 0x117   :  { %v2767_v19 = vpop.xlane.xlu0 %576 }
 0x11b   :  { %v2769_v52 = vpop.xlane.xlu1 %621 }
 0x11c   :  { %v2773_v28 = vmax.f32 %v642_v56, %v2769_v52 }
 0x11d   :  { %v2787_v61 = vpop.xlane.xlu0 %614 }
 0x11e   :  { %v646_v34 = vsub.f32 %v2722_v57, %v2773_v28  ;;  %v652_v4 = vsub.f32 %v2720_v16, %v2773_v28  ;;  %v658_v33 = vsub.f32 %v2724_v1, %v2773_v28  ;;  %v664_v12 = vsub.f32 %v2728_v2, %v2773_v28 }
 0x11f   :  { %v670_v8 = vsub.f32 %v2732_v24, %v2773_v28  ;;  %v641_v57 = vmax.f32 %v639_v3, %v2767_v19  ;;  %v676_v1 = vsub.f32 %v2736_v50, %v2773_v28  ;;  %v682_v2 = vsub.f32 %v432_v21, %v2773_v28 }
 0x120   :  { %v649_v7 = vmul.f32 1.442695, %v646_v34  ;;  %v655_v60 = vmul.f32 1.442695, %v652_v4  ;;  %v661_v56 = vmul.f32 1.442695, %v658_v33  ;;  %v688_v4 = vsub.f32 %v470_v13, %v2773_v28 }
 0x121   :  { %v667_v16 = vmul.f32 1.442695, %v664_v12  ;;  %v2794_v63 = vmax.f32 %v641_v57, %v2787_v61  ;;  %v673_v34 = vmul.f32 1.442695, %v670_v8  ;;  %v679_v33 = vmul.f32 1.442695, %v676_v1 }
 0x122   :  { %2179 = vpow2.f32 %v649_v7  ;;  %v685_v12 = vmul.f32 1.442695, %v682_v2  ;;  %v694_v50 = vsub.f32 %v508_v37, %v2773_v28  ;;  %v691_v21 = vmul.f32 1.442695, %v688_v4 }
 0x123   :  { %2181 = vpow2.f32 %v655_v60  ;;  %v645_v24 = vsub.f32 %v2718_v35, %v2794_v63  ;;  %v651_v60 = vsub.f32 %v2716_v55, %v2794_v63  ;;  %v657_v3 = vsub.f32 %v2726_v32, %v2794_v63 }
 0x124   :  { %2183 = vpow2.f32 %v661_v56  ;;  %v663_v13 = vsub.f32 %v2730_v51, %v2794_v63  ;;  %v697_v35 = vmul.f32 1.442695, %v694_v50  ;;  %v700_v8 = vsub.f32 %v2751_v0, %v2773_v28 }
 0x125   :  { %2185 = vpow2.f32 %v667_v16  ;;  %v647_v7 = vmul.f32 1.442695, %v645_v24  ;;  %v653_v56 = vmul.f32 1.442695, %v651_v60  ;;  %v659_v55 = vmul.f32 1.442695, %v657_v3 }
 0x126   :  { %2187 = vpow2.f32 %v673_v34  ;;  %v669_v37 = vsub.f32 %v2734_v53, %v2794_v63  ;;  %v665_v32 = vmul.f32 1.442695, %v663_v13  ;;  %v675_v16 = vsub.f32 %v2738_v29, %v2794_v63 }
 0x127   :  { %2189 = vpow2.f32 %v679_v33  ;;  %v703_v51 = vmul.f32 1.442695, %v700_v8  ;;  %v706_v0 = vsub.f32 %v2760_v6, %v2773_v28  ;;  %v681_v34 = vsub.f32 %v2740_v59, %v2794_v63 }
 0x128   :  { %2191 = vpow2.f32 %v685_v12  ;;  %v671_v53 = vmul.f32 1.442695, %v669_v37  ;;  %v677_v29 = vmul.f32 1.442695, %v675_v16  ;;  %v687_v33 = vsub.f32 %v2744_v40, %v2794_v63 }
 0x129   :  { %2193 = vpow2.f32 %v691_v21  ;;  %v709_v6 = vmul.f32 1.442695, %v706_v0  ;;  %v712_v12 = vsub.f32 %v2769_v52, %v2773_v28  ;;  %v683_v59 = vmul.f32 1.442695, %v681_v34 }
 0x12a   :  { %2195 = vpow2.f32 %v647_v7  ;;  %v693_v21 = vsub.f32 %v2749_v36, %v2794_v63  ;;  %v689_v40 = vmul.f32 1.442695, %v687_v33  ;;  %v705_v36 = vsub.f32 %v2767_v19, %v2794_v63 }
 0x12b   :  { %2197 = vpow2.f32 %v653_v56  ;;  %v699_v56 = vsub.f32 %v2758_v17, %v2794_v63  ;;  %v715_v52 = vmul.f32 1.442695, %v712_v12  ;;  %v711_v16 = vsub.f32 %v2787_v61, %v2794_v63 }
 0x12c   :  { %2199 = vpow2.f32 %v697_v35  ;;  %v695_v8 = vmul.f32 1.442695, %v693_v21  ;;  %v707_v19 = vmul.f32 1.442695, %v705_v36 }
 0x12d   :  { %2201 = vpow2.f32 %v659_v55  ;;  %v701_v17 = vmul.f32 1.442695, %v699_v56 }
 0x12e   :  { %2203 = vpow2.f32 %v665_v32 }
 0x12f   :  { %v2810_v57 = vpop.eup %2179  ;;  %2205 = vpow2.f32 %v703_v51 }
 0x130   :  { %v2814_v1 = vpop.eup %2181  ;;  %2207 = vpow2.f32 %v671_v53 }
 0x131   :  { %v718_v2 = vadd.f32 %v2814_v1, %v2810_v57  ;;  %v2822_v4 = vpop.eup %2183  ;;  %2209 = vpow2.f32 %v677_v29  ;;  %v713_v29 = vmul.f32 1.442695, %v711_v16 }
 0x132   :  { %v2827_v60 = vpop.eup %2185  ;;  %2211 = vpow2.f32 %v709_v6 }
 0x133   :  { %v720_v24 = vadd.f32 %v2822_v4, %v718_v2  ;;  %v2834_v3 = vpop.eup %2187  ;;  %2213 = vpow2.f32 %v683_v59 }
 0x134   :  { %v2839_v13 = vpop.eup %2189  ;;  %2215 = vpow2.f32 %v689_v40 }
 0x135   :  { %v722_v50 = vadd.f32 %v2827_v60, %v720_v24  ;;  %v2841_v28 = vpop.eup %2191  ;;  %2217 = vpow2.f32 %v715_v52 }
 0x136   :  { %v2846_v55 = vpop.eup %2193  ;;  %2219 = vpow2.f32 %v695_v8 }
 0x137   :  { %v724_v7 = vadd.f32 %v2834_v3, %v722_v50  ;;  %v2848_v37 = vpop.eup %2195  ;;  %2221 = vpow2.f32 %v701_v17 }
 0x138   :  { %v2853_v51 = vpop.eup %2197  ;;  %2223 = vpow2.f32 %v707_v19 }
 0x139   :  { %v726_v35 = vadd.f32 %v2839_v13, %v724_v7  ;;  %v2855_v0 = vpop.eup %2199  ;;  %v717_v53 = vadd.f32 %v2853_v51, %v2848_v37  ;;  %2225 = vpow2.f32 %v713_v29 }
 0x13a   :  { %v2860_v34 = vpop.eup %2201 }
 0x13b   :  { %v728_v32 = vadd.f32 %v2841_v28, %v726_v35  ;;  %v719_v61 = vadd.f32 %v2860_v34, %v717_v53  ;;  %v2864_v63 = vpop.eup %2203 }
 0x13c   :  { %v2866_v33 = vpop.eup %2205 }
 0x13d   :  { %v730_v2 = vadd.f32 %v2846_v55, %v728_v32  ;;  %v721_v6 = vadd.f32 %v2864_v63, %v719_v61  ;;  %v2869_v12 = vpop.eup %2207 }
 0x13e   :  { %v2873_v21 = vpop.eup %2209 }
 0x13f   :  { %v732_v24 = vadd.f32 %v2855_v0, %v730_v2  ;;  %v723_v59 = vadd.f32 %v2869_v12, %v721_v6  ;;  %v2875_v7 = vpop.eup %2211 }
 0x140   :  { %v2878_v56 = vpop.eup %2213 }
 0x141   :  { %v734_v50 = vadd.f32 %v2866_v33, %v732_v24  ;;  %v725_v40 = vadd.f32 %v2873_v21, %v723_v59  ;;  %v2882_v8 = vpop.eup %2215  ;;  %v2902_v59 = vld [vmem:[#allocation2 + $0x138] sm:$0xff] }
 0x142   :  { %v2884_v36 = vpop.eup %2217 }
 0x143   :  { %v736_v52 = vadd.f32 %v2875_v7, %v734_v50  ;;  %v727_v35 = vadd.f32 %v2878_v56, %v725_v40  ;;  %v2887_v17 = vpop.eup %2219  ;;  %v2900_v50 = vld [vmem:[#allocation2 + $0x18] sm:$0xff] }
 0x144   :  { %v2891_v19 = vpop.eup %2221 }
 0x145   :  { %v729_v32 = vadd.f32 %v2882_v8, %v727_v35  ;;  %v738_v16 = vadd.f32 %v2884_v36, %v736_v52  ;;  %3501 = vst [vmem:[#allocation65_spill] sm:$0xff] %v2891_v19  ;;  %v2894_v24 = vpop.eup %2223  ;;  %v2906_v52 = vld [vmem:[#allocation2] sm:$0xff] }
 0x146   :  { %3502 = vst [vmem:[#allocation66_spill] sm:$0xff] %v2894_v24  ;;  %v2897_v61 = vpop.eup %2225  ;;  %v2908_v35 = vld [vmem:[#allocation2 + $0x120] sm:$0xff] }
 0x147   :  { %v731_v2 = vadd.f32 %v2887_v17, %v729_v32  ;;  %2227 = vrcp.f32 %v738_v16  ;;  %v2912_v16 = vld [vmem:[#allocation2 + $0x150] sm:$0xff]  ;;  %v2970_v32 = vld [vmem:[#allocation2 + $0x1b8] sm:$0xff] }
 0x149   :  { %v733_v53 = vadd.f32 %v2891_v19, %v731_v2  ;;  %v2914_v2 = vld [vmem:[#allocation2 + $0x30] sm:$0xff] }
 0x14b   :  { %v735_v29 = vadd.f32 %v2894_v24, %v733_v53 }
 0x14d   :  { %v737_v6 = vadd.f32 %v2897_v61, %v735_v29  ;;  %v2918_v29 = vld [vmem:[#allocation2 + $0x168] sm:$0xff] }
 0x14f   :  { %2229 = vrcp.f32 %v737_v6  ;;  %v2920_v6 = vld [vmem:[#allocation2 + $0x48] sm:$0xff] }
 0x154   :  { %v2228_v49 = vpop.eup %2227 }
 0x155   :  { %v775_v19 = vmul.f32 %v2228_v49, %v2884_v36  ;;  %v742_v15 = vmul.f32 %v2228_v49, %v2810_v57  ;;  %v745_v53 = vmul.f32 %v2228_v49, %v2814_v1  ;;  %v748_v26 = vmul.f32 %v2228_v49, %v2822_v4 }
 0x156   :  { %v751_v44 = vmul.f32 %v2228_v49, %v2827_v60  ;;  %v754_v40 = vmul.f32 %v2228_v49, %v2834_v3  ;;  %v757_v25 = vmul.f32 %v2228_v49, %v2839_v13  ;;  %v760_v10 = vmul.f32 %v2228_v49, %v2841_v28 }
 0x157   :  { %v763_v14 = vmul.f32 %v2228_v49, %v2846_v55  ;;  %v766_v24 = vmul.f32 %v2228_v49, %v2855_v0  ;;  %v769_v36 = vmul.f32 %v2228_v49, %v2866_v33  ;;  %v772_v57 = vmul.f32 %v2228_v49, %v2875_v7 }
 0x15c   :  { %v2230_v58 = vpop.eup %2229 }
 0x15d   :  { %v774_v1 = vmul.f32 %v2230_v58, %v2897_v61  ;;  %v741_v4 = vmul.f32 %v2230_v58, %v2848_v37  ;;  %v744_v60 = vmul.f32 %v2230_v58, %v2853_v51  ;;  %v747_v3 = vmul.f32 %v2230_v58, %v2860_v34 }
 0x15e   :  { %v750_v13 = vmul.f32 %v2230_v58, %v2864_v63  ;;  %v753_v28 = vmul.f32 %v2230_v58, %v2869_v12  ;;  %v756_v55 = vmul.f32 %v2230_v58, %v2873_v21  ;;  %v759_v0 = vmul.f32 %v2230_v58, %v2878_v56  ;;  %v3505_v56 = vld [vmem:[#allocation65_spill] sm:$0xff] }
 0x15f   :  { %v3022_v38 = vpack.c.bf16 %v775_v19, %v774_v1  ;;  %v3024_v33 = vpack.c.bf16 %v742_v15, %v741_v4  ;;  %v3026_v49 = vpack.c.bf16 %v745_v53, %v744_v60  ;;  %v3028_v7 = vpack.c.bf16 %v748_v26, %v747_v3  ;;  %v3506_v15 = vld [vmem:[#allocation66_spill] sm:$0xff] }
 0x160   :  { %v3030_v37 = vpack.c.bf16 %v751_v44, %v750_v13  ;;  %v3032_v51 = vpack.c.bf16 %v754_v40, %v753_v28  ;;  %v3034_v34 = vpack.c.bf16 %v757_v25, %v756_v55  ;;  %v3036_v63 = vpack.c.bf16 %v760_v10, %v759_v0  ;;  %v3512_v0 = vld [vmem:[#allocation67_spill] sm:$0xff] }
 0x161   :  { %v762_v12 = vmul.f32 %v2230_v58, %v2882_v8  ;;  %v765_v21 = vmul.f32 %v2230_v58, %v2887_v17  ;;  %v768_v19 = vmul.f32 %v2230_v58, %v3505_v56  ;;  %v771_v61 = vmul.f32 %v2230_v58, %v3506_v15 }
 0x162   :  { %v3507_v26 = vcombine.high %v2906_v52, %v2908_v35  ;;  %v3508_v25 = vcombine.high %v2900_v50, %v2902_v59  ;;  %v3509_v10 = vcombine.high %v2914_v2, %v2912_v16  ;;  %v3510_v17 = vcombine.high %v2920_v6, %v2918_v29 }
 0x163   :  { %v3058_v53 = vpack.c.bf16 %v763_v14, %v762_v12  ;;  %v3060_v1 = vpack.c.bf16 %v766_v24, %v765_v21  ;;  %v3062_v4 = vpack.c.bf16 %v769_v36, %v768_v19  ;;  %v3064_v60 = vpack.c.bf16 %v772_v57, %v771_v61  ;;  %v3514_v14 = vld [vmem:[#allocation38_spill] sm:$0xff] }
 0x164   :  { %v808_v44 = vmul.bf16 %v3507_v26, %v3024_v33  ;;  %v844_v40 = vmul.bf16 %v3508_v25, %v3026_v49  ;;  %v910_v8 = vmul.bf16 %v3509_v10, %v3028_v7  ;;  %v946_v58 = vmul.bf16 %v3510_v17, %v3030_v37 }
 0x165   :  { %v3511_v28 = vcombine.high %v2926_v48, %v2924_v47  ;;  %v3513_v56 = vcombine.high %v2932_v9, %v3512_v0  ;;  %v3515_v24 = vcombine.high %v3514_v14, %v2956_v20  ;;  %v3516_v57 = vcombine.high %v2574_v46, %v2568_v45 }
 0x166   :  { %v850_v3 = vadd.bf16 %v844_v40, %v808_v44  ;;  %v952_v13 = vadd.bf16 %v946_v58, %v910_v8  ;;  %v3517_v21 = vcombine.high %v2602_v27, %v2596_v11  ;;  %v3518_v61 = vcombine.high %v2630_v62, %v2624_v30  ;;  %v3534_v11 = vld [vmem:[#allocation28_spill] sm:$0xff] }
 0x167   :  { %v1012_v55 = vmul.bf16 %v3511_v28, %v3032_v51  ;;  %v1048_v15 = vmul.bf16 %v3513_v56, %v3034_v34  ;;  %v1114_v36 = vmul.bf16 %v3515_v24, %v3036_v63  ;;  %v1150_v12 = vmul.bf16 %v3516_v57, %v3058_v53 }
 0x168   :  { %v1216_v19 = vmul.bf16 %v3517_v21, %v3060_v1  ;;  %v1252_v26 = vmul.bf16 %v3518_v61, %v3062_v4  ;;  %v856_v44 = vunpack.c.l.bf16 %v850_v3  ;;  %v862_v25 = vunpack.c.h.bf16 %v850_v3  ;;  %v3521_v61 = vld [vmem:[#allocation16_spill] sm:$0xff]  ;;  %v3522_v3 = vld [vmem:[#allocation17_spill] sm:$0xff] }
 0x169   :  { %v958_v40 = vunpack.c.l.bf16 %v952_v13  ;;  %v964_v10 = vunpack.c.h.bf16 %v952_v13  ;;  %v1054_v8 = vadd.bf16 %v1048_v15, %v1012_v55  ;;  %v1156_v17 = vadd.bf16 %v1150_v12, %v1114_v36 }
 0x16a   :  { %v1258_v58 = vadd.bf16 %v1252_v26, %v1216_v19  ;;  %v3519_v28 = vcombine.high %v2661_v43, %v2654_v39  ;;  %v3520_v57 = vcombine.high %v2690_v31, %v2684_v18  ;;  %v3523_v30 = vcombine.high %v3521_v61, %v3522_v3  ;;  %v3528_v31 = vld [vmem:[#allocation20_spill] sm:$0xff] }
 0x16b   :  { %v970_v14 = vadd.f32 %v958_v40, %v856_v44  ;;  %v976_v24 = vadd.f32 %v964_v10, %v862_v25  ;;  %v1060_v55 = vunpack.c.l.bf16 %v1054_v8  ;;  %v1066_v15 = vunpack.c.h.bf16 %v1054_v8  ;;  %v3524_v44 = vld [vmem:[#allocation12_spill] sm:$0xff]  ;;  %v3525_v25 = vld [vmem:[#allocation14_spill] sm:$0xff] }
 0x16c   :  { %v1318_v56 = vmul.bf16 %v3519_v28, %v3064_v60  ;;  %v1354_v21 = vmul.bf16 %v3520_v57, %v3022_v38  ;;  %v810_v13 = vmul.bf16 %v3523_v30, %v3024_v33  ;;  %v1162_v36 = vunpack.c.l.bf16 %v1156_v17  ;;  %v3527_v57 = vld [vmem:[#allocation21_spill] sm:$0xff]  ;;  %v3531_v8 = vld [vmem:[#allocation24_spill] sm:$0xff] }
 0x16d   :  { %v1168_v12 = vunpack.c.h.bf16 %v1156_v17  ;;  %v1264_v19 = vunpack.c.l.bf16 %v1258_v58  ;;  %v1270_v26 = vunpack.c.h.bf16 %v1258_v58  ;;  %v3526_v40 = vcombine.high %v3524_v44, %v3525_v25  ;;  %v3530_v30 = vld [vmem:[#allocation25_spill] sm:$0xff] }
 0x16e   :  { %v1360_v39 = vadd.bf16 %v1354_v21, %v1318_v56  ;;  %v1072_v28 = vadd.f32 %v1060_v55, %v970_v14  ;;  %v1078_v18 = vadd.f32 %v1066_v15, %v976_v24  ;;  %v3529_v43 = vcombine.high %v3527_v57, %v3528_v31  ;;  %v3533_v21 = vld [vmem:[#allocation30_spill] sm:$0xff]  ;;  %v3537_v31 = vld [vmem:[#allocation32_spill] sm:$0xff] }
 0x16f   :  { %v846_v10 = vmul.bf16 %v3526_v40, %v3026_v49  ;;  %v3532_v61 = vcombine.high %v3530_v30, %v3531_v8  ;;  %v3535_v25 = vcombine.high %v3533_v21, %v3534_v11  ;;  %v3536_v15 = vld [vmem:[#allocation34_spill] sm:$0xff] }
 0x170   :  { %v912_v3 = vmul.bf16 %v3529_v43, %v3028_v7  ;;  %v1366_v62 = vunpack.c.l.bf16 %v1360_v39  ;;  %v1372_v58 = vunpack.c.h.bf16 %v1360_v39  ;;  %v1174_v14 = vadd.f32 %v1162_v36, %v1072_v28 }
 0x171   :  { %v948_v17 = vmul.bf16 %v3532_v61, %v3030_v37  ;;  %v852_v56 = vadd.bf16 %v846_v10, %v810_v13  ;;  %v1014_v40 = vmul.bf16 %v3535_v25, %v3032_v51  ;;  %v1180_v24 = vadd.f32 %v1168_v12, %v1078_v18 }
 0x172   :  { %v3538_v43 = vcombine.high %v3536_v15, %v3537_v31  ;;  %v3539_v39 = vcombine.high %v2545_v23, %v2970_v32  ;;  %v3540_v13 = vcombine.high %v2586_v5, %v2570_v22  ;;  %v1276_v36 = vadd.f32 %v1264_v19, %v1174_v14  ;;  %v3543_v31 = vld [vmem:[#allocation53_spill] sm:$0xff]  ;;  %v3544_v32 = vld [vmem:[#allocation50_spill] sm:$0xff] }
 0x173   :  { %v954_v55 = vadd.bf16 %v948_v17, %v912_v3  ;;  %v858_v44 = vunpack.c.l.bf16 %v852_v56  ;;  %v864_v27 = vunpack.c.h.bf16 %v852_v56  ;;  %v1282_v18 = vadd.f32 %v1270_v26, %v1180_v24  ;;  %v3541_v17 = vld [vmem:[#allocation45_spill] sm:$0xff] }
 0x174   :  { %v1050_v57 = vmul.bf16 %v3538_v43, %v3034_v34  ;;  %v1116_v61 = vmul.bf16 %v3539_v39, %v3036_v63  ;;  %v1152_v25 = vmul.bf16 %v3540_v13, %v3058_v53  ;;  %v3542_v56 = vcombine.high %v2604_v41, %v3541_v17 }
 0x175   :  { %v960_v3 = vunpack.c.l.bf16 %v954_v55  ;;  %v966_v12 = vunpack.c.h.bf16 %v954_v55  ;;  %v3545_v39 = vcombine.high %v3543_v31, %v3544_v32  ;;  %v1378_v15 = vadd.f32 %v1366_v62, %v1276_v36  ;;  %v3546_v55 = vld [vmem:[#allocation56_spill] sm:$0xff] }
 0x176   :  { %v1056_v10 = vadd.bf16 %v1050_v57, %v1014_v40  ;;  %v1158_v28 = vadd.bf16 %v1152_v25, %v1116_v61  ;;  %v1218_v43 = vmul.bf16 %v3542_v56, %v3060_v1  ;;  %v1384_v11 = vadd.f32 %v1372_v58, %v1282_v18  ;;  %v3548_v56 = vld [vmem:[#allocation61_spill] sm:$0xff] }
 0x177   :  { %v1254_v23 = vmul.bf16 %v3545_v39, %v3062_v4  ;;  %v972_v22 = vadd.f32 %v960_v3, %v858_v44  ;;  %v978_v13 = vadd.f32 %v966_v12, %v864_v27  ;;  %v3547_v61 = vcombine.high %v2663_v54, %v3546_v55 }
 0x178   :  { %v1062_v19 = vunpack.c.l.bf16 %v1056_v10  ;;  %v1068_v26 = vunpack.c.h.bf16 %v1056_v10  ;;  %v1164_v14 = vunpack.c.l.bf16 %v1158_v28  ;;  %v1170_v24 = vunpack.c.h.bf16 %v1158_v28 }
 0x179   :  { %v1390_v57 = vpack.c.bf16 %v1384_v11, %v1378_v15  ;;  %v1260_v40 = vadd.bf16 %v1254_v23, %v1218_v43  ;;  %v1320_v25 = vmul.bf16 %v3547_v61, %v3064_v60  ;;  %v3549_v32 = vcombine.high %v2692_v42, %v3548_v56 }
 0x17a   :  { %v1074_v62 = vadd.f32 %v1062_v19, %v972_v22  ;;  %v1080_v58 = vadd.f32 %v1068_v26, %v978_v13  ;;  %v3550_v27 = vcombine.low %v2906_v52, %v2908_v35  ;;  %v3551_v11 = vcombine.low %v2900_v50, %v2902_v59 }
 0x17b   :  { %v1356_v39 = vmul.bf16 %v3549_v32, %v3022_v38  ;;  %1818 = vmatprep.mubr.bf16.mxu0 %v1390_v57  ;;  %v1266_v15 = vunpack.c.l.bf16 %v1260_v40  ;;  %v1272_v36 = vunpack.c.h.bf16 %v1260_v40  ;;  %v3552_v3 = vcombine.low %v2914_v2, %v2912_v16 }
 0x17c   :  { %v807_v44 = vmul.bf16 %v3550_v27, %v3024_v33  ;;  %v843_v23 = vmul.bf16 %v3551_v11, %v3026_v49  ;;  %v1176_v12 = vadd.f32 %v1164_v14, %v1074_v62  ;;  %v1182_v10 = vadd.f32 %v1170_v24, %v1080_v58  ;;  %v3562_v58 = vld [vmem:[#allocation52_spill] sm:$0xff]  ;;  %v3563_v27 = vld [vmem:[#allocation49_spill] sm:$0xff] }
 0x17d   :  { %v1362_v18 = vadd.bf16 %v1356_v39, %v1320_v25  ;;  %v909_v22 = vmul.bf16 %v3552_v3, %v3028_v7  ;;  %v3553_v52 = vcombine.low %v2920_v6, %v2918_v29  ;;  %v3554_v59 = vcombine.low %v2926_v48, %v2924_v47  ;;  %v3556_v29 = vld [vmem:[#allocation68_spill] sm:$0xff] }
 0x17e   :  { %v849_v28 = vadd.bf16 %v843_v23, %v807_v44  ;;  %v3555_v16 = vcombine.low %v2932_v9, %v3512_v0  ;;  %v1278_v13 = vadd.f32 %v1266_v15, %v1176_v12  ;;  %v1284_v19 = vadd.f32 %v1272_v36, %v1182_v10  ;;  %v3559_v9 = vld [vmem:[#allocation47_spill] sm:$0xff]  ;;  %v3560_v0 = vld [vmem:[#allocation44_spill] sm:$0xff] }
 0x17f   :  { %v945_v35 = vmul.bf16 %v3553_v52, %v3030_v37  ;;  %v1368_v43 = vunpack.c.l.bf16 %v1362_v18  ;;  %v1374_v50 = vunpack.c.h.bf16 %v1362_v18  ;;  %v1011_v32 = vmul.bf16 %v3554_v59, %v3032_v51 }
 0x180   :  { %v1047_v2 = vmul.bf16 %v3555_v16, %v3034_v34  ;;  %v855_v26 = vunpack.c.l.bf16 %v849_v28  ;;  %v861_v14 = vunpack.c.h.bf16 %v849_v28  ;;  %v3557_v6 = vcombine.low %v3556_v29, %v2956_v20  ;;  %v3572_v16 = vld [vmem:[#allocation17_spill] sm:$0xff] }
 0x181   :  { %v951_v24 = vadd.bf16 %v945_v35, %v909_v22  ;;  %v3558_v47 = vcombine.low %v2574_v46, %v2568_v45  ;;  %v1380_v61 = vadd.f32 %v1368_v43, %v1278_v13  ;;  %v1386_v25 = vadd.f32 %v1374_v50, %v1284_v19  ;;  %v3565_v46 = vld [vmem:[#allocation58_spill] sm:$0xff]  ;;  %v3566_v22 = vld [vmem:[#allocation55_spill] sm:$0xff]  ;;  %v3569_v43 = vld [vmem:[#allocation60_spill] sm:$0xff] }
 0x182   :  { %v1053_v57 = vadd.bf16 %v1047_v2, %v1011_v32  ;;  %v1113_v40 = vmul.bf16 %v3557_v6, %v3036_v63  ;;  %v3561_v39 = vcombine.low %v3559_v9, %v3560_v0  ;;  %v3564_v44 = vcombine.low %v3562_v58, %v3563_v27  ;;  %v3568_v35 = vld [vmem:[#allocation63_spill] sm:$0xff]  ;;  %v3571_v32 = vld [vmem:[#allocation16_spill] sm:$0xff] }
 0x183   :  { %v1149_v48 = vmul.bf16 %v3558_v47, %v3058_v53  ;;  %v957_v23 = vunpack.c.l.bf16 %v951_v24  ;;  %v963_v20 = vunpack.c.h.bf16 %v951_v24  ;;  %v1392_v18 = vpack.c.bf16 %v1386_v25, %v1380_v61  ;;  %v3577_v25 = vld [vmem:[#allocation21_spill] sm:$0xff]  ;;  %v3578_v9 = vld [vmem:[#allocation20_spill] sm:$0xff] }
 0x184   :  { %v1215_v62 = vmul.bf16 %v3561_v39, %v3060_v1  ;;  %v1251_v11 = vmul.bf16 %v3564_v44, %v3062_v4  ;;  %v1059_v15 = vunpack.c.l.bf16 %v1053_v57  ;;  %v1065_v36 = vunpack.c.h.bf16 %v1053_v57  ;;  %v3581_v27 = vld [vmem:[#allocation28_spill] sm:$0xff] }
 0x185   :  { %v1155_v3 = vadd.bf16 %v1149_v48, %v1113_v40  ;;  %v3567_v12 = vcombine.low %v3565_v46, %v3566_v22  ;;  %v969_v28 = vadd.f32 %v957_v23, %v855_v26  ;;  %v975_v52 = vadd.f32 %v963_v20, %v861_v14  ;;  %1859 = vmatprep.mubr.bf16.mxu1 %v1392_v18  ;;  %v3574_v26 = vld [vmem:[#allocation12_spill] sm:$0xff]  ;;  %v3575_v14 = vld [vmem:[#allocation14_spill] sm:$0xff] }
 0x186   :  { %v1257_v45 = vadd.bf16 %v1251_v11, %v1215_v62  ;;  %v3570_v50 = vcombine.low %v3568_v35, %v3569_v43  ;;  %v3573_v2 = vcombine.low %v3571_v32, %v3572_v16  ;;  %v3576_v48 = vcombine.low %v3574_v26, %v3575_v14  ;;  %v3583_v23 = vld [vmem:[#allocation34_spill] sm:$0xff]  ;;  %v3584_v20 = vld [vmem:[#allocation32_spill] sm:$0xff]  ;;  %v3589_v43 = vld [vmem:[#allocation41_spill] sm:$0xff] }
 0x187   :  { %v1317_v10 = vmul.bf16 %v3567_v12, %v3064_v60  ;;  %v1161_v19 = vunpack.c.l.bf16 %v1155_v3  ;;  %v1167_v24 = vunpack.c.h.bf16 %v1155_v3  ;;  %v1071_v6 = vadd.f32 %v1059_v15, %v969_v28 }
 0x188   :  { %v1353_v59 = vmul.bf16 %v3570_v50, %v3022_v38  ;;  %v809_v13 = vmul.bf16 %v3573_v2, %v3024_v33  ;;  %v1263_v57 = vunpack.c.l.bf16 %v1257_v45  ;;  %v1269_v29 = vunpack.c.h.bf16 %v1257_v45 }
 0x189   :  { %v1077_v40 = vadd.f32 %v1065_v36, %v975_v52  ;;  %v845_v61 = vmul.bf16 %v3576_v48, %v3026_v49  ;;  %v3579_v0 = vcombine.low %v3577_v25, %v3578_v9  ;;  %v3580_v62 = vcombine.low %v3530_v30, %v3531_v8  ;;  %v3586_v30 = vld [vmem:[#allocation39_spill] sm:$0xff]  ;;  %v3587_v8 = vld [vmem:[#allocation36_spill] sm:$0xff]  ;;  %v2164_v25 = vld [vmem:[#allocation7 + $0x138] sm:$0xff]  }
 0x18a   :  { %v1359_v47 = vadd.bf16 %v1353_v59, %v1317_v10  ;;  %v3582_v44 = vcombine.low %v3533_v21, %v3581_v27  ;;  %v3585_v15 = vcombine.low %v3583_v23, %v3584_v20  ;;  %v1173_v18 = vadd.f32 %v1161_v19, %v1071_v6 }
 0x18b   :  { %v911_v39 = vmul.bf16 %v3579_v0, %v3028_v7  ;;  %v947_v58 = vmul.bf16 %v3580_v62, %v3030_v37  ;;  %v1179_v3 = vadd.f32 %v1167_v24, %v1077_v40  ;;  %v851_v22 = vadd.bf16 %v845_v61, %v809_v13  ;;  %v3596_v62 = vld [vmem:[#allocation18_spill] sm:$0xff] }
 0x18c   :  { %v1013_v11 = vmul.bf16 %v3582_v44, %v3032_v51  ;;  %v1049_v36 = vmul.bf16 %v3585_v15, %v3034_v34  ;;  %v1365_v45 = vunpack.c.l.bf16 %v1359_v47  ;;  %v1371_v46 = vunpack.c.h.bf16 %v1359_v47 }
 0x18d   :  { %v953_v12 = vadd.bf16 %v947_v58, %v911_v39  ;;  %v3588_v28 = vcombine.low %v3586_v30, %v3587_v8  ;;  %v1275_v35 = vadd.f32 %v1263_v57, %v1173_v18  ;;  %v1281_v21 = vadd.f32 %v1269_v29, %v1179_v3  ;;  %v3597_v58 = vld [vmem:[#allocation19_spill] sm:$0xff]  ;;  %v3606_v8 = vld [vmem:[#allocation26_spill] sm:$0xff] }
 0x18e   :  { %v1055_v10 = vadd.bf16 %v1049_v36, %v1013_v11  ;;  %v3590_v50 = vcombine.low %v2586_v5, %v3589_v43  ;;  %v3591_v32 = vcombine.low %v2604_v41, %v3541_v17  ;;  %v857_v2 = vunpack.c.l.bf16 %v851_v22  ;;  %v3592_v5 = vld [vmem:[#allocation50_spill] sm:$0xff]  ;;  %v2165_v11 = vld [vmem:[#allocation7 + $0x170] sm:$0xff]   ;;  %v3605_v30 = vld [vmem:[#allocation27_spill] sm:$0xff] }
 0x18f   :  { %v1115_v52 = vmul.bf16 %v3588_v28, %v3036_v63  ;;  %v863_v13 = vunpack.c.h.bf16 %v851_v22  ;;  %v959_v19 = vunpack.c.l.bf16 %v953_v12  ;;  %v965_v24 = vunpack.c.h.bf16 %v953_v12 }
 0x190   :  { %v1151_v59 = vmul.bf16 %v3590_v50, %v3058_v53  ;;  %v1217_v16 = vmul.bf16 %v3591_v32, %v3060_v1  ;;  %v1377_v6 = vadd.f32 %v1365_v45, %v1275_v35  ;;  %v1383_v40 = vadd.f32 %v1371_v46, %v1281_v21  ;;  %v3608_v35 = vld [vmem:[#allocation31_spill] sm:$0xff]  ;;  %v3609_v21 = vld [vmem:[#allocation29_spill] sm:$0xff] }
 0x191   :  { %v1061_v47 = vunpack.c.l.bf16 %v1055_v10  ;;  %v1067_v26 = vunpack.c.h.bf16 %v1055_v10  ;;  %v971_v57 = vadd.f32 %v959_v19, %v857_v2  ;;  %v977_v29 = vadd.f32 %v965_v24, %v863_v13  ;;  %v2167_v19 = vld [vmem:[#allocation7 + $0x168] sm:$0xff]  }
 0x192   :  { %v1157_v14 = vadd.bf16 %v1151_v59, %v1115_v52  ;;  %v3593_v48 = vcombine.low %v3543_v31, %v3592_v5  ;;  %v1389_v9 = vpack.c.bf16 %v1383_v40, %v1377_v6  ;;  %v3594_v41 = vcombine.low %v2663_v54, %v3546_v55  ;;  %v3599_v54 = vld [vmem:[#allocation13_spill] sm:$0xff]  ;;  %v3600_v55 = vld [vmem:[#allocation15_spill] sm:$0xff]  ;;  %v2166_v59 = vld [vmem:[#allocation7 + $0x130] sm:$0xff]  }
 0x193   :  { %v3595_v0 = vcombine.low %v2692_v42, %v3548_v56  ;;  %v3598_v27 = vcombine.high %v3596_v62, %v3597_v58  ;;  %v1073_v31 = vadd.f32 %v1061_v47, %v971_v57  ;;  %v1079_v23 = vadd.f32 %v1067_v26, %v977_v29  ;;  %v3602_v42 = vld [vmem:[#allocation23_spill] sm:$0xff]  ;;  %v3603_v56 = vld [vmem:[#allocation22_spill] sm:$0xff]  ;;  %v3612_v47 = vld [vmem:[#allocation33_spill] sm:$0xff] }
 0x194   :  { %v1253_v61 = vmul.bf16 %v3593_v48, %v3062_v4  ;;  %v1319_v17 = vmul.bf16 %v3594_v41, %v3064_v60  ;;  %v1163_v20 = vunpack.c.l.bf16 %v1157_v14  ;;  %v1169_v15 = vunpack.c.h.bf16 %v1157_v14  ;;  %1819 = vmatmul.mubr.bf16.vlgmr.msra.gmra.mxu0 %v1389_v9  ;;  %v3611_v40 = vld [vmem:[#allocation35_spill] sm:$0xff]  ;;  %v3614_v29 = vld [vmem:[#allocation40_spill] sm:$0xff]  ;;  %v3615_v14 = vld [vmem:[#allocation37_spill] sm:$0xff] }
 0x195   :  { %v1355_v39 = vmul.bf16 %v3595_v0, %v3022_v38  ;;  %v812_v44 = vmul.bf16 %v3598_v27, %v3024_v33  ;;  %v3601_v3 = vcombine.high %v3599_v54, %v3600_v55  ;;  %v3604_v46 = vcombine.high %v3602_v42, %v3603_v56  ;;  %2098 = vmatpush3.bf16.msra.mxu0 %v2164_v25  ;;  %v3617_v9 = vld [vmem:[#allocation43_spill] sm:$0xff]  ;;  %v3618_v41 = vld [vmem:[#allocation42_spill] sm:$0xff] }
 0x196   :  { %v1259_v36 = vadd.bf16 %v1253_v61, %v1217_v16  ;;  %v1175_v12 = vadd.f32 %v1163_v20, %v1073_v31  ;;  %v1181_v10 = vadd.f32 %v1169_v15, %v1079_v23  ;;  %v3607_v28 = vcombine.high %v3605_v30, %v3606_v8  ;;  %2099 = vmatprep.subr.bf16.mxu0 %v2165_v11  ;;  %v3621_v27 = vld [vmem:[#allocation46_spill] sm:$0xff] }
 0x197   :  { %v1361_v18 = vadd.bf16 %v1355_v39, %v1319_v17  ;;  %v848_v45 = vmul.bf16 %v3601_v3, %v3026_v49  ;;  %v914_v22 = vmul.bf16 %v3604_v46, %v3028_v7  ;;  %v3610_v43 = vcombine.high %v3608_v35, %v3609_v21  ;;  %v3620_v39 = vld [vmem:[#allocation48_spill] sm:$0xff] }
 0x198   :  { %v950_v52 = vmul.bf16 %v3607_v28, %v3030_v37  ;;  %v1265_v32 = vunpack.c.l.bf16 %v1259_v36  ;;  %v1271_v16 = vunpack.c.h.bf16 %v1259_v36  ;;  %v3613_v26 = vcombine.high %v3611_v40, %v3612_v47  ;;  %v2168_v36 = vld [vmem:[#allocation7 + $0x128] sm:$0xff]   ;;  %v3623_v28 = vld [vmem:[#allocation54_spill] sm:$0xff] }
 0x199   :  { %v1016_v50 = vmul.bf16 %v3610_v43, %v3032_v51  ;;  %v1367_v2 = vunpack.c.l.bf16 %v1361_v18  ;;  %v1373_v13 = vunpack.c.h.bf16 %v1361_v18  ;;  %v854_v24 = vadd.bf16 %v848_v45, %v812_v44  ;;  %2100 = vmatpush3.bf16.msra.mxu0 %v2166_v59 }
 0x19a   :  { %v956_v6 = vadd.bf16 %v950_v52, %v914_v22  ;;  %v1052_v57 = vmul.bf16 %v3613_v26, %v3034_v34  ;;  %v3616_v5 = vcombine.high %v3614_v29, %v3615_v14  ;;  %v1277_v61 = vadd.f32 %v1265_v32, %v1175_v12  ;;  %2101 = vmatprep.subr.bf16.mxu0 %v2167_v19  ;;  %v2169_v22 = vld [vmem:[#allocation7 + $0x160] sm:$0xff]   ;;  %v3624_v52 = vld [vmem:[#allocation51_spill] sm:$0xff]  ;;  %v3629_v19 = vld [vmem:[#allocation64_spill] sm:$0xff] }
 0x19b   :  { %v1283_v25 = vadd.f32 %v1271_v16, %v1181_v10  ;;  %v3619_v17 = vcombine.high %v3617_v9, %v3618_v41  ;;  %v3622_v44 = vcombine.high %v3620_v39, %v3621_v27  ;;  %v860_v31 = vunpack.c.l.bf16 %v854_v24  ;;  %v3626_v16 = vld [vmem:[#allocation59_spill] sm:$0xff] }
 0x19c   :  { %v1118_v48 = vmul.bf16 %v3616_v5, %v3036_v63  ;;  %v866_v23 = vunpack.c.h.bf16 %v854_v24  ;;  %v962_v20 = vunpack.c.l.bf16 %v956_v6  ;;  %v968_v15 = vunpack.c.h.bf16 %v956_v6  ;;  %v3627_v24 = vld [vmem:[#allocation57_spill] sm:$0xff] }
 0x19d   :  { %v1154_v0 = vmul.bf16 %v3619_v17, %v3058_v53  ;;  %v1220_v11 = vmul.bf16 %v3622_v44, %v3060_v1  ;;  %v1379_v18 = vadd.f32 %v1367_v2, %v1277_v61  ;;  %v1385_v3 = vadd.f32 %v1373_v13, %v1283_v25  ;;  %2102 = vmatpush3.bf16.msra.mxu0 %v2168_v36  ;;  %v2170_v25 = vld [vmem:[#allocation7 + $0x120] sm:$0xff]  }
 0x19e   :  { %v1058_v45 = vadd.bf16 %v1052_v57, %v1016_v50  ;;  %v974_v12 = vadd.f32 %v962_v20, %v860_v31  ;;  %v980_v10 = vadd.f32 %v968_v15, %v866_v23  ;;  %v3625_v43 = vcombine.high %v3623_v28, %v3624_v52  ;;  %v3630_v57 = vld [vmem:[#allocation62_spill] sm:$0xff]  ;;  %2103 = vmatprep.subr.bf16.mxu0 %v2169_v22  ;;  %v2171_v20 = vld [vmem:[#allocation7 + $0x158] sm:$0xff]  }
 0x19f   :  { %v1160_v46 = vadd.bf16 %v1154_v0, %v1118_v48  ;;  %v3628_v26 = vcombine.high %v3626_v16, %v3627_v24  ;;  %v1391_v59 = vpack.c.bf16 %v1385_v3, %v1379_v18  ;;  %v3631_v48 = vcombine.high %v3629_v19, %v3630_v57 }
 0x1a0   :  { %v1256_v32 = vmul.bf16 %v3625_v43, %v3062_v4  ;;  %v1064_v5 = vunpack.c.l.bf16 %v1058_v45  ;;  %v1070_v2 = vunpack.c.h.bf16 %v1058_v45  ;;  %v3632_v17 = vcombine.low %v3596_v62, %v3597_v58 }
 0x1a1   :  { %v1322_v6 = vmul.bf16 %v3628_v26, %v3064_v60  ;;  %v1166_v13 = vunpack.c.l.bf16 %v1160_v46  ;;  %v1358_v61 = vmul.bf16 %v3631_v48, %v3022_v38  ;;  %1860 = vmatmul.mubr.bf16.vlgmr.msra.gmra.mxu1 %v1391_v59  ;;  %v1172_v23 = vunpack.c.h.bf16 %v1160_v46  ;;  %2104 = vmatpush3.bf16.msra.mxu0 %v2170_v25  ;;  %v2173_v26 = vld [vmem:[#allocation7 + $0x150] sm:$0xff]  }
 0x1a2   :  { %v1262_v50 = vadd.bf16 %v1256_v32, %v1220_v11  ;;  %v811_v0 = vmul.bf16 %v3632_v17, %v3024_v33  ;;  %v1076_v44 = vadd.f32 %v1064_v5, %v974_v12  ;;  %v1082_v31 = vadd.f32 %v1070_v2, %v980_v10  ;;  %2105 = vmatprep.subr.bf16.mxu0 %v2171_v20  ;;  %v2176_v17 = vld [vmem:[#allocation7 + $0x108] sm:$0xff]   ;;  %v2177_v20 = vld [vmem:[#allocation7 + $0x140] sm:$0xff]  }
 0x1a3   :  { %v3633_v11 = vcombine.low %v3599_v54, %v3600_v55  ;;  %v1364_v36 = vadd.bf16 %v1358_v61, %v1322_v6  ;;  %v3634_v45 = vcombine.low %v3602_v42, %v3603_v56  ;;  %v3635_v46 = vcombine.low %v3605_v30, %v3606_v8 }
 0x1a4   :  { %v1268_v18 = vunpack.c.l.bf16 %v1262_v50  ;;  %v1274_v3 = vunpack.c.h.bf16 %v1262_v50  ;;  %v1178_v33 = vadd.f32 %v1166_v13, %v1076_v44  ;;  %v1184_v58 = vadd.f32 %v1172_v23, %v1082_v31 }
 0x1a5   :  { %v847_v15 = vmul.bf16 %v3633_v11, %v3026_v49  ;;  %v913_v62 = vmul.bf16 %v3634_v45, %v3028_v7  ;;  %v949_v22 = vmul.bf16 %v3635_v46, %v3030_v37  ;;  %v1370_v10 = vunpack.c.l.bf16 %v1364_v36  ;;  %v2172_v49 = vld [vmem:[#allocation7 + $0x118] sm:$0xff]  }
 0x1a6   :  { %v1376_v43 = vunpack.c.h.bf16 %v1364_v36  ;;  %v3636_v54 = vcombine.low %v3608_v35, %v3609_v21  ;;  %v3637_v7 = vcombine.low %v3611_v40, %v3612_v47  ;;  %v1280_v56 = vadd.f32 %v1268_v18, %v1178_v33  ;;  %2106 = vmatpush3.bf16.msra.mxu0 %v2172_v49 }
 0x1a7   :  { %v853_v12 = vadd.bf16 %v847_v15, %v811_v0  ;;  %v1286_v32 = vadd.f32 %v1274_v3, %v1184_v58  ;;  %v955_v8 = vadd.bf16 %v949_v22, %v913_v62  ;;  %v3638_v59 = vcombine.low %v3614_v29, %v3615_v14  ;;  %v2174_v29 = vld [vmem:[#allocation7 + $0x110] sm:$0xff]   ;;  %2107 = vmatprep.subr.bf16.mxu0 %v2173_v26  ;;  %v2178_v15 = vld [vmem:[#allocation7 + $0x100] sm:$0xff]  }
 0x1a8   :  { %v1015_v55 = vmul.bf16 %v3636_v54, %v3032_v51  ;;  %v1051_v42 = vmul.bf16 %v3637_v7, %v3034_v34  ;;  %v3639_v51 = vcombine.low %v3617_v9, %v3618_v41  ;;  %v1382_v21 = vadd.f32 %v1370_v10, %v1280_v56  ;;  %v2004_v10 = vld [vmem:[%s3347_s3] ss:$0 sm:$0xff]  ;;  %s2306_s3 = scalar_lea.vmem %s1917_s8, 256 }
 0x1a9   :  { %v859_v30 = vunpack.c.l.bf16 %v853_v12  ;;  %v865_v37 = vunpack.c.h.bf16 %v853_v12  ;;  %v1117_v5 = vmul.bf16 %v3638_v59, %v3036_v63  ;;  %v1388_v34 = vadd.f32 %v1376_v43, %v1286_v32  ;;  %p2307_p1 = scmp.ne.s32.totalorder %s1917_s8, %s2306_s3  ;;  %p2312_p3 = scmp.lt.s32.totalorder %s2306_s3, %s2306_s3 }
 0x1aa   :  { %v1057_v6 = vadd.bf16 %v1051_v42, %v1015_v55  ;;  %v1153_v35 = vmul.bf16 %v3639_v51, %v3058_v53  ;;  %v3640_v40 = vcombine.low %v3620_v39, %v3621_v27  ;;  %v3641_v2 = vcombine.low %v3623_v28, %v3624_v52  ;;  %v2175_v53 = vld [vmem:[#allocation7 + $0x148] sm:$0xff]   ;;  %2108 = vmatpush3.bf16.msra.mxu0 %v2174_v29 }
 0x1ab   :  { %v961_v63 = vunpack.c.l.bf16 %v955_v8  ;;  %v967_v14 = vunpack.c.h.bf16 %v955_v8  ;;  %v1394_v48 = vpack.c.bf16 %v1388_v34, %v1382_v21  ;;  %v3642_v39 = vcombine.low %v3626_v16, %v3627_v24  ;;  %2109 = vmatprep.subr.bf16.mxu0 %v2175_v53  ;;  %p2313_p4 = por %p2312_p3, %p2311_p2 }
 0x1ac   :  { %v1219_v47 = vmul.bf16 %v3640_v40, %v3060_v1  ;;  %v1255_v13 = vmul.bf16 %v3641_v2, %v3062_v4  ;;  %v1063_v50 = vunpack.c.l.bf16 %v1057_v6  ;;  %v1159_v9 = vadd.bf16 %v1153_v35, %v1117_v5 }
 0x1ad   :  { %v1321_v1 = vmul.bf16 %v3642_v39, %v3064_v60  ;;  %v973_v27 = vadd.f32 %v961_v63, %v859_v30  ;;  %v979_v61 = vadd.f32 %v967_v14, %v865_v37  ;;  %v1069_v25 = vunpack.c.h.bf16 %v1057_v6  ;;  %1900 = vmatprep.mubr.bf16.mxu0 %v1394_v48  ;;  %p2314_p5 = pnand %p2313_p4, %p2307_p1 }
 0x1ae   :  { %v1261_v41 = vadd.bf16 %v1255_v13, %v1219_v47  ;;  %v3643_v4 = vcombine.low %v3629_v19, %v3630_v57  ;;  %v1165_v52 = vunpack.c.l.bf16 %v1159_v9  ;;  %v1171_v31 = vunpack.c.h.bf16 %v1159_v9  ;;  %2110 = vmatpush3.bf16.msra.mxu0 %v2176_v17 }
 0x1af   :  { %v1075_v0 = vadd.f32 %v1063_v50, %v973_v27  ;;  %v1081_v44 = vadd.f32 %v1069_v25, %v979_v61  ;;  %2111 = vmatprep.subr.bf16.mxu0 %v2177_v20 }
 0x1b0   :  { %v1357_v28 = vmul.bf16 %v3643_v4, %v3022_v38  ;;  %v1267_v24 = vunpack.c.l.bf16 %v1261_v41  ;;  %v1273_v11 = vunpack.c.h.bf16 %v1261_v41 }
 0x1b1   :  { %v1177_v16 = vadd.f32 %v1165_v52, %v1075_v0  ;;  %v1183_v60 = vadd.f32 %v1171_v31, %v1081_v44 }
 0x1b2   :  { %v1363_v23 = vadd.bf16 %v1357_v28, %v1321_v1  ;;  %2112 = vmatpush3.bf16.msra.mxu0 %v2178_v15 }
 0x1b3   :  { %v1279_v18 = vadd.f32 %v1267_v24, %v1177_v16  ;;  %v1285_v3 = vadd.f32 %v1273_v11, %v1183_v60 }
 0x1b4   :  { %v1369_v19 = vunpack.c.l.bf16 %v1363_v23  ;;  %v1375_v38 = vunpack.c.h.bf16 %v1363_v23 }
 0x1b6   :  { %v1381_v57 = vadd.f32 %v1369_v19, %v1279_v18  ;;  %v1387_v36 = vadd.f32 %v1375_v38, %v1285_v3 }
 0x1b8   :  { %v1393_v45 = vpack.c.bf16 %v1387_v36, %v1381_v57 }
 0x1ba   :  { %1901 = vmatmul.mubr.bf16.vlgmr.msra.gmra.mxu0 %v1393_v45 }
 0x254   :  { %v2069_v62 = vpop.f32.mrf.mxu0 }
 0x256   :  { %v2070_v33 = vpop.f32.mrf.mxu0 }
 0x257   :  { %v2071_v22 = vadd.f32 %v2070_v33, %v2069_v62 }
 0x258   :  { %v2072_v12 = vpop.f32.mrf.mxu0 }
 0x259   :  { %v1821_v54 = vadd.f32 %v2071_v22, %v2004_v10 }
 0x25a   :  { %v2073_v43 = vpop.f32.mrf.mxu0 }
 0x25b   :  { %v2074_v55 = vadd.f32 %v2073_v43, %v2072_v12 }
 0x25d   :  { %v1824_v30 = vadd.f32 %v2074_v55, %v2004_v10 }
 0x261   :  { %v2091_v58 = vpop.f32.mrf.mxu1 }
 0x263   :  { %v2092_v46 = vpop.f32.mrf.mxu1 }
 0x264   :  { %v2093_v42 = vadd.f32 %v2092_v46, %v2091_v58 }
 0x265   :  { %v2094_v49 = vpop.f32.mrf.mxu1 }
 0x266   :  { %v1862_v26 = vadd.f32 %v2093_v42, %v1821_v54 }
 0x267   :  { %v2095_v56 = vpop.f32.mrf.mxu1 }
 0x268   :  { %v2096_v6 = vadd.f32 %v2095_v56, %v2094_v49 }
 0x26a   :  { %v1865_v51 = vadd.f32 %v2096_v6, %v1824_v30 }
 0x27a   :  { %v2113_v7 = vpop.f32.mrf.mxu0 }
 0x27c   :  { %v2114_v32 = vpop.f32.mrf.mxu0 }
 0x27d   :  { %v2115_v37 = vadd.f32 %v2114_v32, %v2113_v7 }
 0x27e   :  { %v2116_v8 = vpop.f32.mrf.mxu0 }
 0x27f   :  { %v1903_v59 = vadd.f32 %v2115_v37, %v1862_v26 }
 0x280   :  { %v2117_v5 = vpop.f32.mrf.mxu0 }
 0x281   :  { %1909 = vst [vmem:[#allocation8] sm:$0xff] %v1903_v59  ;;  %v2118_v35 = vadd.f32 %v2117_v5, %v2116_v8 }
 0x283   :  { %v1906_v21 = vadd.f32 %v2118_v35, %v1865_v51 }
 0x285   :  { %1910 = vst [vmem:[#allocation8 + $0x8] sm:$0xff] %v1906_v21 }
 0x286   :  { %2317 = shalt.err (!%p2314_p5)
}
 0x287   :  { %s2341_s9 = smov 128   ;;  %s2342_s10 = smov 8  }
 0x288   :  { %1922 = dma.vmem_to_hbm [thread:$0]  %s1917_s8, 256, %s3348_s4, [#allocation4], %s2341_s9, %s2341_s9, %s2342_s10  }
 0x289   :  { %2330 = dma.done.wait [#allocation4], 256  }
 0x28a   :  { %2331 = vsyncadd [#allocation4], 4294967040 }
 0x28b   :  { %1926 = vsyncpa [#allocation3], 1 }
 0x28c   :  { %1927 = vsyncpa [#allocation6], 1 }
 0x28d   :  { %1928 = vsyncpa [#allocation4], 1 }

</bundles_post_ra>
